<compile_context>
chip_gen: v6e
topology: v6e:2x2x1
jax: 0.10.0
libtpu: 0.0.40
codegen_flags: <defaults>
</compile_context>

<pallas_src>
import functools

import jax
import jax.numpy as jnp
from jax.experimental import pallas as pl
from jax.experimental.pallas import tpu as pltpu

NAMES = ["diag", "proc", "med"]


def _round_up(x, m):
    return ((x + m - 1) // m) * m


def _vmem_cap_bytes():
    # ~96 MiB cap on v5e/v6e (128 MiB physical VMEM), ~48 MiB on v7x (64 MiB).
    try:
        phys = int(pltpu.get_tpu_info().vmem_capacity_bytes)
    except Exception:
        phys = 64 * 1024 * 1024  # conservative: assume v7x if the query fails
    return (phys * 3) // 4


# --------------------------------------------------------------------------
# Pallas kernels
# --------------------------------------------------------------------------
def _layernorm_kernel(x_ref, g_ref, b_ref, o_ref):
    # Single-block LayerNorm over the feature axis; gamma/beta are already
    # gathered per row in the wrapper.
    x = x_ref[...]                                        # (rows, dim) f32
    mean = jnp.mean(x, axis=-1, keepdims=True)
    # One-pass variance: E[x^2] - mean^2 (one XLU reduction instead of two).
    var = jnp.mean(x * x, axis=-1, keepdims=True) - mean * mean
    inv = jax.lax.rsqrt(jnp.maximum(var, 0.0) + 1e-5)
    o_ref[...] = (x - mean) * inv * g_ref[...] + b_ref[...]


def _hyperedge_encode_kernel(ht_ref, x_ref, e_ref, invdeg_ref, out_ref, acc_ref):
    # Fused over names:  e_hyp[g] = inv_deg[g] * (H^T[g] @ X[g]) + E[g]
    # grid = (name [parallel], edge_tiles [parallel], node_tiles [arbitrary])
    k = pl.program_id(2)

    @pl.when(k == 0)
    def _():
        acc_ref[...] = jnp.zeros_like(acc_ref)

    # bf16 x bf16 -> f32 accumulate on the MXU.
    acc_ref[...] += jnp.dot(
        ht_ref[...], x_ref[...], preferred_element_type=jnp.float32
    )

    @pl.when(k == pl.num_programs(2) - 1)
    def _():
        out_ref[...] = (
            acc_ref[...] * invdeg_ref[...] + e_ref[...]
        ).astype(out_ref.dtype)


# --------------------------------------------------------------------------
# Wrappers
# --------------------------------------------------------------------------
def batched_layernorm(xs, gammas, betas):
    """LayerNorm over the feature axis for a list of (rows_i, dim) tensors,
    each with its own (dim,) gamma/beta, fused into a single single-tile
    pallas_call. gamma/beta are gathered per row in the wrapper."""
    dim = xs[0].shape[1]

    padded, gid_rows, row_info = [], [], []
    for g, x in enumerate(xs):
        rp = _round_up(x.shape[0], 8)
        padded.append(jnp.pad(x, ((0, rp - x.shape[0]), (0, 0))))
        gid_rows.append(jnp.full((rp,), g, jnp.int32))
        row_info.append((x.shape[0], rp))
    x_cat = jnp.concatenate(padded, axis=0)
    gid = jnp.concatenate(gid_rows)
    gamma_rows = jnp.take(jnp.stack(gammas), gid, axis=0)     # (rows, dim)
    beta_rows = jnp.take(jnp.stack(betas), gid, axis=0)       # (rows, dim)
    rows = x_cat.shape[0]

    out = pl.pallas_call(
        _layernorm_kernel,
        grid=(1,),
        in_specs=[
            pl.BlockSpec((rows, dim), lambda i: (0, 0)),
            pl.BlockSpec((rows, dim), lambda i: (0, 0)),
            pl.BlockSpec((rows, dim), lambda i: (0, 0)),
        ],
        out_specs=pl.BlockSpec((rows, dim), lambda i: (0, 0)),
        out_shape=jax.ShapeDtypeStruct((rows, dim), jnp.float32),
        compiler_params=pltpu.CompilerParams(
            dimension_semantics=("arbitrary",),
        ),
    )(x_cat, gamma_rows, beta_rows)

    # Split back to the original row counts (padded rows hold `beta`; sliced off).
    outs, off = [], 0
    for r, rp in row_info:
        outs.append(out[off:off + r])
        off += rp
    return outs


def fused_hyperedge_encode(Ht_s, X_s, E_s, invdeg_s, *, te_pref=512, tk_pref=512):
    """e_hyp[g] = inv_deg[g] * (H^T[g] @ X[g]) + E[g] for all names in one call.

    Ht_s      : (G, TE, TK)  bf16
    X_s       : (G, TK, dim) bf16
    E_s       : (G, TE, dim) f32
    invdeg_s  : (G, TE, 1)   f32
    TE/TK are already padded to multiples of 128 by the caller.
    te_pref/tk_pref: sweep up to 1024-2048 for large graphs on v5e/v6e.
    """
    G, TE, TK = Ht_s.shape
    dim = X_s.shape[-1]

    te = min(te_pref, TE)                    # edge tile (sublane axis, mult of 128)
    tk = min(tk_pref, TK)                    # reduction tile (lane axis of Ht)
    te_p = _round_up(TE, te)
    tk_p = _round_up(TK, tk)
    if te_p != TE or tk_p != TK:
        Ht_s = jnp.pad(Ht_s, ((0, 0), (0, te_p - TE), (0, tk_p - TK)))
        X_s = jnp.pad(X_s, ((0, 0), (0, tk_p - TK), (0, 0)))
        E_s = jnp.pad(E_s, ((0, 0), (0, te_p - TE), (0, 0)))
        invdeg_s = jnp.pad(invdeg_s, ((0, 0), (0, te_p - TE), (0, 0)))

    grid = (G, te_p // te, tk_p // tk)

    # Honest per-step VMEM footprint: double-buffered inputs/output + f32 acc.
    step_bytes = (
        2 * (te * tk * 2          # Ht tile (bf16)
             + tk * dim * 2       # X tile (bf16)
             + te * dim * 4       # E tile (f32)
             + te * 4             # 1/deg tile (f32)
             + te * dim * 4)      # output tile (f32)
        + te * dim * 4            # accumulator scratch
    )
    vmem_limit = min(max(step_bytes, 32 * 1024 * 1024), _vmem_cap_bytes())

    out = pl.pallas_call(
        _hyperedge_encode_kernel,
        grid_spec=pltpu.PrefetchScalarGridSpec(
            num_scalar_prefetch=0,
            grid=grid,
            in_specs=[
                pl.BlockSpec((pl.Squeezed(), te, tk), lambda g, j, k: (g, j, k)),
                pl.BlockSpec((pl.Squeezed(), tk, dim), lambda g, j, k: (g, k, 0)),
                pl.BlockSpec((pl.Squeezed(), te, dim), lambda g, j, k: (g, j, 0)),
                pl.BlockSpec((pl.Squeezed(), te, 1), lambda g, j, k: (g, j, 0)),
            ],
            out_specs=pl.BlockSpec(
                (pl.Squeezed(), te, dim), lambda g, j, k: (g, j, 0)
            ),
            scratch_shapes=[pltpu.VMEM((te, dim), jnp.float32)],
        ),
        # f32 output kept for parity with the torch reference; switch to bf16
        # if downstream tolerates it (halves writeback on v7x).
        out_shape=jax.ShapeDtypeStruct((G, te_p, dim), jnp.float32),
        compiler_params=pltpu.CompilerParams(
            dimension_semantics=("parallel", "parallel", "arbitrary"),
            vmem_limit_bytes=vmem_limit,
        ),
    )(Ht_s, X_s, E_s, invdeg_s)
    return out[:, :TE]


# --------------------------------------------------------------------------
# HGTCL forward (index/scatter glue in plain JAX, hot compute in Pallas)
# --------------------------------------------------------------------------
def build_incidence_t(hyperedge_index, num_nodes, n_ehr_edges):
    """Dense H^T (total_edges, num_nodes) directly in bf16 plus 1/degree.

    Equivalent to torch.sparse_coo_tensor(idx, ones).coalesce().float() with
    appended self-loop edges; duplicates sum, matching coalesce().
    bf16 is lossless for the small integer counts in H."""
    total_edges = n_ehr_edges + num_nodes
    node_idx = jnp.arange(num_nodes, dtype=jnp.int32)
    edge_idx = jnp.arange(n_ehr_edges, total_edges, dtype=jnp.int32)
    nodes = jnp.concatenate([hyperedge_index[0].astype(jnp.int32), node_idx])
    edges = jnp.concatenate([hyperedge_index[1].astype(jnp.int32), edge_idx])

    # Built transposed so the kernel is a plain row-major matmul.
    # TODO(synk): for realistically sparse hypergraphs replace the dense H^T@X
    # with a scalar-prefetch gather/segment-sum kernel keyed by per-edge node
    # lists; also hoist this build out of the jitted forward for static graphs.
    Ht = jnp.zeros((total_edges, num_nodes), jnp.bfloat16).at[edges, nodes].add(1.0)

    # Edge degrees (column sums of H) via segment-sum -> no second matmul.
    deg = jnp.zeros((total_edges,), jnp.float32).at[edges].add(1.0)
    # Guard empty hyperedges (torch would produce inf -> NaN); deliberate
    # semantic change: empty-edge aggregation is 0.
    inv_deg = jnp.where(deg > 0, 1.0 / deg, 0.0).reshape(total_edges, 1)
    return Ht, inv_deg


@functools.partial(jax.jit, static_argnames=("num_dict_items", "n_ehr_edges"))
def hgtcl_forward(hyperedge_index_dict, X, E, num_dict_items, n_ehr_edges):
    num_dict = dict(num_dict_items)

    # Common padded shape across names (multiples of 128 for native bf16 tiles
    # and lane alignment), stacked on a leading "name" axis.
    te_common = _round_up(max(n_ehr_edges + num_dict[n] for n in NAMES), 128)
    tk_common = _round_up(max(num_dict[n] for n in NAMES), 128)

    Ht_l, X_l, E_l, d_l = [], [], [], []
    for n in NAMES:
        num_nodes = num_dict[n]
        total_edges = n_ehr_edges + num_nodes
        Ht, inv_deg = build_incidence_t(
            hyperedge_index_dict[n], num_nodes, n_ehr_edges
        )
        Ht_l.append(
            jnp.pad(Ht, ((0, te_common - total_edges), (0, tk_common - num_nodes)))
        )
        X_l.append(
            jnp.pad(X[n].astype(jnp.bfloat16), ((0, tk_common - num_nodes), (0, 0)))
        )
        E_l.append(jnp.pad(E[n], ((0, te_common - total_edges), (0, 0))))
        d_l.append(jnp.pad(inv_deg, ((0, te_common - total_edges), (0, 0))))

    e_hyp = fused_hyperedge_encode(
        jnp.stack(Ht_l), jnp.stack(X_l), jnp.stack(E_l), jnp.stack(d_l)
    )

    X_hat = {}
    E_hat = {}
    for i, n in enumerate(NAMES):
        # TODO(synk): HGTEncoder (graph_encoder) source is not provided;
        # identity pass-through for (node, edge) -> no extra copy kernel.
        X_hat[n] = X[n]
        E_hat[n] = e_hyp[i, :n_ehr_edges]
    E_mem = {
        "dp": E_hat["diag"] + E_hat["proc"],   # tiny elementwise add: plain JAX
        "m": E_hat["med"],
    }
    return X_hat, E_mem


# --------------------------------------------------------------------------
# Deterministic parameter init + demo (get_features equivalent)
# --------------------------------------------------------------------------
if __name__ == "__main__":
    key = jax.random.PRNGKey(0)
    dim = 128                         # lane-dense feature width (multiple of 128)
    n_ehr_edges = 40
    num_dict = {"diag": 64, "proc": 48, "med": 32}
    nnz = 96

    # Parameters (from __init__): embedding tables + per-name LayerNorm affine.
    node_emb, edge_emb = {}, {}
    for i, n in enumerate(NAMES):
        node_emb[n] = jax.random.normal(
            jax.random.fold_in(key, i), (num_dict[n], dim), jnp.float32
        )
        edge_emb[n] = jax.random.normal(
            jax.random.fold_in(key, 10 + i),
            (n_ehr_edges + num_dict[n], dim),
            jnp.float32,
        )
    ln_g_n = {n: jnp.ones((dim,), jnp.float32) for n in NAMES}
    ln_b_n = {n: jnp.zeros((dim,), jnp.float32) for n in NAMES}
    ln_g_e = {n: jnp.ones((dim,), jnp.float32) for n in NAMES}
    ln_b_e = {n: jnp.zeros((dim,), jnp.float32) for n in NAMES}

    # get_features(): all six LayerNorms fused into ONE single-tile Pallas call.
    xs = [node_emb[n] for n in NAMES] + [edge_emb[n] for n in NAMES]
    gs = [ln_g_n[n] for n in NAMES] + [ln_g_e[n] for n in NAMES]
    bs = [ln_b_n[n] for n in NAMES] + [ln_b_e[n] for n in NAMES]
    normed = batched_layernorm(xs, gs, bs)
    X = {n: normed[i] for i, n in enumerate(NAMES)}
    E = {n: normed[3 + i] for i, n in enumerate(NAMES)}

    # Synthetic hyperedge COO indices (row 0: node ids, row 1: ehr-edge ids).
    hyperedge_index_dict = {}
    for i, n in enumerate(NAMES):
        k_idx = jax.random.fold_in(key, 100 + i)
        node_ids = jax.random.randint(k_idx, (nnz,), 0, num_dict[n], jnp.int32)
        edge_ids = jnp.arange(nnz, dtype=jnp.int32) % n_ehr_edges
        hyperedge_index_dict[n] = jnp.stack([node_ids, edge_ids])

    X_hat, E_mem = hgtcl_forward(
        hyperedge_index_dict,
        X,
        E,
        num_dict_items=tuple(sorted(num_dict.items())),
        n_ehr_edges=n_ehr_edges,
    )
    jax.block_until_ready((X_hat, E_mem))

    # ---- correctness checks against plain-JAX f32 references ----
    x0 = node_emb["diag"]
    mu = x0.mean(-1, keepdims=True)
    va = ((x0 - mu) ** 2).mean(-1, keepdims=True)
    ref_ln = (x0 - mu) * jax.lax.rsqrt(va + 1e-5) * ln_g_n["diag"] + ln_b_n["diag"]
    assert jnp.allclose(X["diag"], ref_ln, atol=1e-3, rtol=1e-3)

    def ref_encode(n):
        num_nodes = num_dict[n]
        total = n_ehr_edges + num_nodes
        idx = hyperedge_index_dict[n]
        nodes = jnp.concatenate([idx[0], jnp.arange(num_nodes, dtype=jnp.int32)])
        edges = jnp.concatenate(
            [idx[1], jnp.arange(n_ehr_edges, total, dtype=jnp.int32)]
        )
        H = jnp.zeros((num_nodes, total), jnp.float32).at[nodes, edges].add(1.0)
        deg = H.sum(0)
        inv = jnp.where(deg > 0, 1.0 / deg, 0.0)[:, None]
        return (inv * (H.T @ X[n]) + E[n])[:n_ehr_edges]

    # bf16 MXU feeds -> loose (5e-2) tolerance vs. the f32 reference.
    ref_dp = ref_encode("diag") + ref_encode("proc")
    ref_m = ref_encode("med")
    assert jnp.allclose(E_mem["dp"], ref_dp, atol=5e-2, rtol=5e-2)
    assert jnp.allclose(E_mem["m"], ref_m, atol=5e-2, rtol=5e-2)
    assert X_hat["diag"].shape == (num_dict["diag"], dim)
    assert E_mem["dp"].shape == (n_ehr_edges, dim)
    assert E_mem["m"].shape == (n_ehr_edges, dim)
    print("KERNEL_OK")
</pallas_src>

<mosaic_0001>
module attributes {stable_mosaic.version = 11 : i64} {
  func.func @_layernorm_kernel(%arg0: i32, %arg1: memref<408x128xf32, #tpu.memory_space<vmem>>, %arg2: memref<408x128xf32, #tpu.memory_space<vmem>>, %arg3: memref<408x128xf32, #tpu.memory_space<vmem>>, %arg4: memref<408x128xf32, #tpu.memory_space<vmem>>) attributes {dimension_semantics = [#tpu.dimension_semantics<arbitrary>], iteration_bounds = array<i64: 1>, scalar_prefetch = 0 : i64, scratch_operands = 0 : i64, tpu.core_type = #tpu.core_type<tc>, window_params = [{pipeline_mode = #tpu.pipeline_mode<synchronous>, transform_indices = @transform_0, window_bounds = array<i64: 408, 128>}, {pipeline_mode = #tpu.pipeline_mode<synchronous>, transform_indices = @transform_1, window_bounds = array<i64: 408, 128>}, {pipeline_mode = #tpu.pipeline_mode<synchronous>, transform_indices = @transform_2, window_bounds = array<i64: 408, 128>}, {pipeline_mode = #tpu.pipeline_mode<synchronous>, transform_indices = @transform_3, window_bounds = array<i64: 408, 128>}]} {
    %c0 = arith.constant 0 : index
    %c0_0 = arith.constant 0 : index
    %0 = vector.load %arg1[%c0, %c0_0] : memref<408x128xf32, #tpu.memory_space<vmem>>, vector<408x128xf32>
    %cst = arith.constant dense<0.000000e+00> : vector<408xf32>
    %1 = vector.multi_reduction <add>, %0, %cst [1] : vector<408x128xf32> to vector<408xf32>
    %2 = vector.shape_cast %1 : vector<408xf32> to vector<408x1xf32>
    %cst_1 = arith.constant 1.280000e+02 : f32
    %3 = vector.broadcast %cst_1 : f32 to vector<408x1xf32>
    %4 = arith.divf %2, %3 : vector<408x1xf32>
    %5 = arith.mulf %0, %0 : vector<408x128xf32>
    %cst_2 = arith.constant dense<0.000000e+00> : vector<408xf32>
    %6 = vector.multi_reduction <add>, %5, %cst_2 [1] : vector<408x128xf32> to vector<408xf32>
    %7 = vector.shape_cast %6 : vector<408xf32> to vector<408x1xf32>
    %cst_3 = arith.constant 1.280000e+02 : f32
    %8 = vector.broadcast %cst_3 : f32 to vector<408x1xf32>
    %9 = arith.divf %7, %8 : vector<408x1xf32>
    %10 = arith.mulf %4, %4 : vector<408x1xf32>
    %11 = arith.subf %9, %10 : vector<408x1xf32>
    %cst_4 = arith.constant 0.000000e+00 : f32
    %12 = vector.broadcast %cst_4 : f32 to vector<408x1xf32>
    %13 = arith.maximumf %11, %12 : vector<408x1xf32>
    %cst_5 = arith.constant 9.99999974E-6 : f32
    %14 = vector.broadcast %cst_5 : f32 to vector<408x1xf32>
    %15 = arith.addf %13, %14 : vector<408x1xf32>
    %16 = math.rsqrt %15 : vector<408x1xf32>
    %17 = vector.broadcast %4 : vector<408x1xf32> to vector<408x128xf32>
    %18 = arith.subf %0, %17 : vector<408x128xf32>
    %19 = vector.broadcast %16 : vector<408x1xf32> to vector<408x128xf32>
    %20 = arith.mulf %18, %19 : vector<408x128xf32>
    %c0_6 = arith.constant 0 : index
    %c0_7 = arith.constant 0 : index
    %21 = vector.load %arg2[%c0_6, %c0_7] : memref<408x128xf32, #tpu.memory_space<vmem>>, vector<408x128xf32>
    %22 = arith.mulf %20, %21 : vector<408x128xf32>
    %c0_8 = arith.constant 0 : index
    %c0_9 = arith.constant 0 : index
    %23 = vector.load %arg3[%c0_8, %c0_9] : memref<408x128xf32, #tpu.memory_space<vmem>>, vector<408x128xf32>
    %24 = arith.addf %22, %23 : vector<408x128xf32>
    %c0_10 = arith.constant 0 : index
    %c0_11 = arith.constant 0 : index
    %25 = vector.load %arg4[%c0_10, %c0_11] : memref<408x128xf32, #tpu.memory_space<vmem>>, vector<408x128xf32>
    tpu.vector_store %arg4[%c0_10, %c0_11], %24 {strides = array<i32>} : memref<408x128xf32, #tpu.memory_space<vmem>>, vector<408x128xf32>,
    return
  }
  func.func @transform_0(%arg0: i32) -> (i32, i32) {
    %c0_i32 = arith.constant 0 : i32
    %c0_i32_0 = arith.constant 0 : i32
    %c0_i32_1 = arith.constant 0 : i32
    return %c0_i32, %c0_i32_0 : i32, i32
  }
  func.func @transform_1(%arg0: i32) -> (i32, i32) {
    %c0_i32 = arith.constant 0 : i32
    %c0_i32_0 = arith.constant 0 : i32
    %c0_i32_1 = arith.constant 0 : i32
    return %c0_i32, %c0_i32_0 : i32, i32
  }
  func.func @transform_2(%arg0: i32) -> (i32, i32) {
    %c0_i32 = arith.constant 0 : i32
    %c0_i32_0 = arith.constant 0 : i32
    %c0_i32_1 = arith.constant 0 : i32
    return %c0_i32, %c0_i32_0 : i32, i32
  }
  func.func @transform_3(%arg0: i32) -> (i32, i32) {
    %c0_i32 = arith.constant 0 : i32
    %c0_i32_0 = arith.constant 0 : i32
    %c0_i32_1 = arith.constant 0 : i32
    return %c0_i32, %c0_i32_0 : i32, i32
  }
}

</mosaic_0001>

<bundles_post_ra>
// kernel: tpu_custom_call.1
= control target key start
LH: loop header
LB: loop body
LE: loop exit
PB: predicated region body
PF: predicated region fallthrough
CT: control target
= control target key end

     0   :  { %8 = vsyncpa [#allocation3], 0  ;;  %s2332_s0 = inlined_call_operand.hbm [shape: f32[408,128], index: 0, kind: input, shape index: {}]   ;;  %s2333_s1 = inlined_call_operand.hbm [shape: f32[408,128], index: 1, kind: input, shape index: {}]   ;;  %s2334_s2 = inlined_call_operand.hbm [shape: f32[408,128], index: 2, kind: input, shape index: {}]   ;;  %s2335_s3 = inlined_call_operand.hbm [shape: f32[408,128], index: 3, kind: output, shape index: {}]  }
   0x1   :  { %9 = vsyncpa [#allocation6], 0 }
   0x2   :  { %10 = vsyncpa [#allocation4], 0  ;;  %s1298_s12 = smov [#allocation5]   ;;  %s1299_s14 = smov [#allocation2]  }
   0x3   :  { %s28_s13 = sshll.u32 %s1298_s12, 4  ;;  %s16_s15 = sshll.u32 %s1299_s14, 4  ;;  %s29_s13 = int_to_ptr.vmem [resolvable:$true] %s28_s13  ;;  %s17_s15 = int_to_ptr.vmem [resolvable:$true] %s16_s15 }
   0x4   :  { %s1220_s16 = scalar_lea.vmem %s29_s13, 6528  ;;  %p1225_p1 = scmp.lt.s32.totalorder %s29_s13, %s29_s13 }
   0x5   :  { %p1221_p0 = scmp.ne.s32.totalorder %s29_s13, %s1220_s16  ;;  %p1226_p2 = scmp.lt.s32.totalorder %s1220_s16, %s1220_s16 }
   0x7   :  { %p1227_p3 = por %p1226_p2, %p1225_p1 }
   0x9   :  { %p1228_p4 = pnand %p1227_p3, %p1221_p0 }
   0xb   :  { %1231 = shalt.err (!%p1228_p4)
}
   0xc   :  { %s1300_s17 = smov 128   ;;  %s1301_s18 = smov 8  }
   0xd   :  { %34 = dma.hbm_to_vmem [thread:$0]  %s2333_s1, 6528, %s29_s13, [#allocation6], %s1300_s17, %s1300_s17, %s1301_s18  }
   0xe   :  { %s1240_s21 = scalar_lea.vmem %s17_s15, 6528  ;;  %p1245_p6 = scmp.lt.s32.totalorder %s17_s15, %s17_s15 }
   0xf   :  { %p1241_p5 = scmp.ne.s32.totalorder %s17_s15, %s1240_s21  ;;  %p1246_p7 = scmp.lt.s32.totalorder %s1240_s21, %s1240_s21 }
  0x11   :  { %p1247_p8 = por %p1246_p7, %p1245_p6 }
  0x13   :  { %p1248_p9 = pnand %p1247_p8, %p1241_p5 }
  0x15   :  { %1251 = shalt.err (!%p1248_p9)
}
  0x16   :  { %22 = dma.hbm_to_vmem [thread:$0]  %s2332_s0, 6528, %s17_s15, [#allocation3], %s1300_s17, %s1300_s17, %s1301_s18  }
  0x17   :  { %s1302_s24 = smov [#allocation7]  }
  0x18   :  { %s40_s25 = sshll.u32 %s1302_s24, 4  ;;  %s41_s25 = int_to_ptr.vmem [resolvable:$true] %s40_s25 }
  0x19   :  { %s1260_s26 = scalar_lea.vmem %s41_s25, 6528  ;;  %p1265_p11 = scmp.lt.s32.totalorder %s41_s25, %s41_s25 }
  0x1a   :  { %p1261_p10 = scmp.ne.s32.totalorder %s41_s25, %s1260_s26  ;;  %p1266_p12 = scmp.lt.s32.totalorder %s1260_s26, %s1260_s26 }
  0x1c   :  { %p1267_p13 = por %p1266_p12, %p1265_p11 }
  0x1e   :  { %p1268_p0 = pnand %p1267_p13, %p1261_p10 }
  0x20   :  { %1271 = shalt.err (!%p1268_p0)
}
  0x21   :  { %46 = dma.hbm_to_vmem [thread:$0]  %s2334_s2, 6528, %s41_s25, [#allocation6], %s1300_s17, %s1300_s17, %s1301_s18  }
  0x22   :  { %1292 = dma.done.wait [#allocation3], 6528  }
  0x23   :  { %1293 = vsyncadd [#allocation3], 4294960768 }
  0x24   :  { %1294 = dma.done.wait [#allocation6], 13056  }
  0x25   :  { %1295 = vsyncadd [#allocation6], 4294954240  ;;  %v1342_v0 = vld [vmem:[#allocation2 + $0x10] sm:$0xff]  ;;  %v1344_v1 = vld [vmem:[#allocation2] sm:$0xff]  ;;  %s1303_s0 = smov [#allocation8]  }
  0x26   :  { %2435 = vst [vmem:[#allocation12_spill] sm:$0xff] %v1342_v0  ;;  %111 = vadd.xlane.f32.xlu1 %v1342_v0  ;;  %107 = vadd.xlane.f32.xlu0 %v1344_v1  ;;  %v1348_v2 = vld [vmem:[#allocation2 + $0x18] sm:$0xff]  ;;  %v1350_v3 = vld [vmem:[#allocation2 + $0x8] sm:$0xff]  ;;  %v1356_v5 = vld [vmem:[#allocation2 + $0x20] sm:$0xff]  ;;  %v261_v50 = vmul.f32 %v1344_v1, %v1344_v1  ;;  %v263_v53 = vmul.f32 %v1342_v0, %v1342_v0  ;;  %s1082_s2 = sshll.u32 %s1303_s0, 4  ;;  %s1083_s2 = int_to_ptr.vmem [resolvable:$true] %s1082_s2 }
  0x27   :  { %2436 = vst [vmem:[#allocation13_spill] sm:$0xff] %v1348_v2  ;;  %v1354_v4 = vld [vmem:[#allocation2 + $0x28] sm:$0xff]  ;;  %v1360_v6 = vld [vmem:[#allocation2 + $0x38] sm:$0xff]  ;;  %v1362_v7 = vld [vmem:[#allocation2 + $0x30] sm:$0xff]  ;;  %v262_v52 = vmul.f32 %v1350_v3, %v1350_v3  ;;  %v264_v54 = vmul.f32 %v1348_v2, %v1348_v2  ;;  %v265_v55 = vmul.f32 %v1356_v5, %v1356_v5  ;;  %s1272_s28 = scalar_lea.vmem %s1083_s2, 6528  ;;  %p1277_p2 = scmp.lt.s32.totalorder %s1083_s2, %s1083_s2 }
  0x28   :  { %2437 = vst [vmem:[#allocation14_spill] sm:$0xff] %v1354_v4  ;;  %2438 = vst [vmem:[#allocation15_spill] sm:$0xff] %v1360_v6  ;;  %v1366_v8 = vld [vmem:[#allocation2 + $0x48] sm:$0xff]  ;;  %v1368_v9 = vld [vmem:[#allocation2 + $0x40] sm:$0xff]  ;;  %v266_v56 = vmul.f32 %v1354_v4, %v1354_v4  ;;  %v267_v57 = vmul.f32 %v1362_v7, %v1362_v7  ;;  %v268_v58 = vmul.f32 %v1360_v6, %v1360_v6  ;;  %p1273_p1 = scmp.ne.s32.totalorder %s1083_s2, %s1272_s28  ;;  %p1278_p3 = scmp.lt.s32.totalorder %s1272_s28, %s1272_s28 }
  0x29   :  { %2439 = vst [vmem:[#allocation16_spill] sm:$0xff] %v1366_v8  ;;  %v1372_v10 = vld [vmem:[#allocation2 + $0x58] sm:$0xff]  ;;  %v1374_v11 = vld [vmem:[#allocation2 + $0x50] sm:$0xff]  ;;  %v1378_v12 = vld [vmem:[#allocation2 + $0x68] sm:$0xff]  ;;  %v269_v59 = vmul.f32 %v1368_v9, %v1368_v9  ;;  %v270_v60 = vmul.f32 %v1366_v8, %v1366_v8 }
  0x2a   :  { %113 = vadd.xlane.f32.xlu1 %v1348_v2  ;;  %109 = vadd.xlane.f32.xlu0 %v1350_v3  ;;  %2440 = vst [vmem:[#allocation17_spill] sm:$0xff] %v1372_v10  ;;  %2441 = vst [vmem:[#allocation18_spill] sm:$0xff] %v1378_v12  ;;  %v1380_v13 = vld [vmem:[#allocation2 + $0x60] sm:$0xff]  ;;  %v1384_v14 = vld [vmem:[#allocation2 + $0x78] sm:$0xff]  ;;  %v271_v61 = vmul.f32 %v1374_v11, %v1374_v11  ;;  %v272_v62 = vmul.f32 %v1372_v10, %v1372_v10  ;;  %p1279_p4 = por %p1278_p3, %p1277_p2 }
  0x2b   :  { %2442 = vst [vmem:[#allocation19_spill] sm:$0xff] %v1384_v14  ;;  %v1386_v15 = vld [vmem:[#allocation2 + $0x70] sm:$0xff]  ;;  %v1390_v16 = vld [vmem:[#allocation2 + $0x88] sm:$0xff]  ;;  %v1392_v17 = vld [vmem:[#allocation2 + $0x80] sm:$0xff]  ;;  %v273_v63 = vmul.f32 %v1380_v13, %v1380_v13 }
  0x2c   :  { %2443 = vst [vmem:[#allocation20_spill] sm:$0xff] %v1390_v16  ;;  %2444 = vst [vmem:[#allocation21_spill] sm:$0xff] %v1392_v17  ;;  %v1396_v18 = vld [vmem:[#allocation2 + $0x98] sm:$0xff]  ;;  %v1398_v19 = vld [vmem:[#allocation2 + $0x90] sm:$0xff]  ;;  %p1280_p5 = pnand %p1279_p4, %p1273_p1 }
  0x2d   :  { %2445 = vst [vmem:[#allocation22_spill] sm:$0xff] %v1396_v18  ;;  %2446 = vst [vmem:[#allocation23_spill] sm:$0xff] %v1398_v19  ;;  %v1402_v20 = vld [vmem:[#allocation2 + $0xa8] sm:$0xff]  ;;  %v1404_v21 = vld [vmem:[#allocation2 + $0xa0] sm:$0xff] }
  0x2e   :  { %117 = vadd.xlane.f32.xlu1 %v1354_v4  ;;  %115 = vadd.xlane.f32.xlu0 %v1356_v5  ;;  %2447 = vst [vmem:[#allocation24_spill] sm:$0xff] %v1402_v20  ;;  %2448 = vst [vmem:[#allocation25_spill] sm:$0xff] %v1404_v21  ;;  %v1408_v22 = vld [vmem:[#allocation2 + $0xb8] sm:$0xff]  ;;  %v1410_v23 = vld [vmem:[#allocation2 + $0xb0] sm:$0xff] }
  0x2f   :  { %2449 = vst [vmem:[#allocation26_spill] sm:$0xff] %v1408_v22  ;;  %2450 = vst [vmem:[#allocation27_spill] sm:$0xff] %v1410_v23  ;;  %v1414_v24 = vld [vmem:[#allocation2 + $0xc8] sm:$0xff]  ;;  %v1416_v25 = vld [vmem:[#allocation2 + $0xc0] sm:$0xff] }
  0x30   :  { %2451 = vst [vmem:[#allocation28_spill] sm:$0xff] %v1414_v24  ;;  %2452 = vst [vmem:[#allocation29_spill] sm:$0xff] %v1416_v25  ;;  %v1420_v26 = vld [vmem:[#allocation2 + $0xd8] sm:$0xff]  ;;  %v1422_v27 = vld [vmem:[#allocation2 + $0xd0] sm:$0xff] }
  0x31   :  { %2453 = vst [vmem:[#allocation30_spill] sm:$0xff] %v1420_v26  ;;  %2454 = vst [vmem:[#allocation31_spill] sm:$0xff] %v1422_v27  ;;  %v1426_v28 = vld [vmem:[#allocation2 + $0xe8] sm:$0xff]  ;;  %v1428_v29 = vld [vmem:[#allocation2 + $0xe0] sm:$0xff] }
  0x32   :  { %121 = vadd.xlane.f32.xlu1 %v1360_v6  ;;  %119 = vadd.xlane.f32.xlu0 %v1362_v7  ;;  %2455 = vst [vmem:[#allocation32_spill] sm:$0xff] %v1426_v28  ;;  %2456 = vst [vmem:[#allocation33_spill] sm:$0xff] %v1428_v29  ;;  %v1432_v30 = vld [vmem:[#allocation2 + $0xf8] sm:$0xff]  ;;  %v1434_v31 = vld [vmem:[#allocation2 + $0xf0] sm:$0xff] }
  0x33   :  { %2457 = vst [vmem:[#allocation34_spill] sm:$0xff] %v1432_v30  ;;  %2458 = vst [vmem:[#allocation35_spill] sm:$0xff] %v1434_v31  ;;  %v1438_v32 = vld [vmem:[#allocation2 + $0x108] sm:$0xff]  ;;  %v1440_v33 = vld [vmem:[#allocation2 + $0x100] sm:$0xff] }
  0x34   :  { %2459 = vst [vmem:[#allocation36_spill] sm:$0xff] %v1438_v32  ;;  %2460 = vst [vmem:[#allocation37_spill] sm:$0xff] %v1440_v33  ;;  %v1444_v34 = vld [vmem:[#allocation2 + $0x118] sm:$0xff]  ;;  %v1446_v35 = vld [vmem:[#allocation2 + $0x110] sm:$0xff] }
  0x35   :  { %2461 = vst [vmem:[#allocation38_spill] sm:$0xff] %v1444_v34  ;;  %2462 = vst [vmem:[#allocation39_spill] sm:$0xff] %v1446_v35  ;;  %v1450_v36 = vld [vmem:[#allocation2 + $0x128] sm:$0xff]  ;;  %v1452_v37 = vld [vmem:[#allocation2 + $0x120] sm:$0xff] }
  0x36   :  { %125 = vadd.xlane.f32.xlu1 %v1366_v8  ;;  %123 = vadd.xlane.f32.xlu0 %v1368_v9  ;;  %2463 = vst [vmem:[#allocation40_spill] sm:$0xff] %v1450_v36  ;;  %2464 = vst [vmem:[#allocation41_spill] sm:$0xff] %v1452_v37  ;;  %v1456_v38 = vld [vmem:[#allocation2 + $0x138] sm:$0xff]  ;;  %v1458_v39 = vld [vmem:[#allocation2 + $0x130] sm:$0xff] }
  0x37   :  { %2465 = vst [vmem:[#allocation42_spill] sm:$0xff] %v1456_v38  ;;  %2466 = vst [vmem:[#allocation43_spill] sm:$0xff] %v1458_v39  ;;  %v1462_v40 = vld [vmem:[#allocation2 + $0x148] sm:$0xff]  ;;  %v1464_v41 = vld [vmem:[#allocation2 + $0x140] sm:$0xff] }
  0x38   :  { %2467 = vst [vmem:[#allocation44_spill] sm:$0xff] %v1462_v40  ;;  %2468 = vst [vmem:[#allocation45_spill] sm:$0xff] %v1464_v41  ;;  %v1468_v42 = vld [vmem:[#allocation2 + $0x158] sm:$0xff]  ;;  %v1470_v43 = vld [vmem:[#allocation2 + $0x150] sm:$0xff] }
  0x39   :  { %v1474_v44 = vld [vmem:[#allocation2 + $0x168] sm:$0xff]  ;;  %v1476_v45 = vld [vmem:[#allocation2 + $0x160] sm:$0xff]  ;;  %v1480_v46 = vld [vmem:[#allocation2 + $0x178] sm:$0xff] }
  0x3a   :  { %129 = vadd.xlane.f32.xlu1 %v1372_v10  ;;  %127 = vadd.xlane.f32.xlu0 %v1374_v11  ;;  %v1482_v47 = vld [vmem:[#allocation2 + $0x170] sm:$0xff]  ;;  %v1486_v48 = vld [vmem:[#allocation2 + $0x188] sm:$0xff]  ;;  %v1488_v49 = vld [vmem:[#allocation2 + $0x180] sm:$0xff] }
  0x3b   :  { %v1494_v51 = vld [vmem:[#allocation2 + $0x190] sm:$0xff] }
  0x3e   :  { %133 = vadd.xlane.f32.xlu1 %v1378_v12  ;;  %131 = vadd.xlane.f32.xlu0 %v1380_v13 }
  0x42   :  { %137 = vadd.xlane.f32.xlu1 %v1384_v14  ;;  %135 = vadd.xlane.f32.xlu0 %v1386_v15 }
  0x46   :  { %141 = vadd.xlane.f32.xlu1 %v1390_v16  ;;  %139 = vadd.xlane.f32.xlu0 %v1392_v17 }
  0x4a   :  { %145 = vadd.xlane.f32.xlu1 %v1396_v18  ;;  %143 = vadd.xlane.f32.xlu0 %v1398_v19 }
  0x4e   :  { %149 = vadd.xlane.f32.xlu1 %v1402_v20  ;;  %147 = vadd.xlane.f32.xlu0 %v1404_v21 }
  0x52   :  { %153 = vadd.xlane.f32.xlu1 %v1408_v22  ;;  %151 = vadd.xlane.f32.xlu0 %v1410_v23 }
  0x56   :  { %157 = vadd.xlane.f32.xlu1 %v1414_v24  ;;  %155 = vadd.xlane.f32.xlu0 %v1416_v25 }
  0x5a   :  { %161 = vadd.xlane.f32.xlu1 %v1420_v26  ;;  %159 = vadd.xlane.f32.xlu0 %v1422_v27 }
  0x5e   :  { %165 = vadd.xlane.f32.xlu1 %v1426_v28  ;;  %163 = vadd.xlane.f32.xlu0 %v1428_v29 }
  0x62   :  { %169 = vadd.xlane.f32.xlu1 %v1432_v30  ;;  %167 = vadd.xlane.f32.xlu0 %v1434_v31 }
  0x66   :  { %173 = vadd.xlane.f32.xlu1 %v1438_v32  ;;  %171 = vadd.xlane.f32.xlu0 %v1440_v33 }
  0x6a   :  { %177 = vadd.xlane.f32.xlu1 %v1444_v34  ;;  %175 = vadd.xlane.f32.xlu0 %v1446_v35 }
  0x6e   :  { %181 = vadd.xlane.f32.xlu1 %v1450_v36  ;;  %179 = vadd.xlane.f32.xlu0 %v1452_v37 }
  0x72   :  { %185 = vadd.xlane.f32.xlu1 %v1456_v38  ;;  %183 = vadd.xlane.f32.xlu0 %v1458_v39 }
  0x76   :  { %189 = vadd.xlane.f32.xlu1 %v1462_v40  ;;  %187 = vadd.xlane.f32.xlu0 %v1464_v41 }
  0x7a   :  { %193 = vadd.xlane.f32.xlu1 %v1468_v42  ;;  %191 = vadd.xlane.f32.xlu0 %v1470_v43 }
  0x7e   :  { %197 = vadd.xlane.f32.xlu1 %v1474_v44  ;;  %195 = vadd.xlane.f32.xlu0 %v1476_v45 }
  0x82   :  { %201 = vadd.xlane.f32.xlu1 %v1480_v46  ;;  %199 = vadd.xlane.f32.xlu0 %v1482_v47 }
  0x86   :  { %205 = vadd.xlane.f32.xlu1 %v1486_v48  ;;  %203 = vadd.xlane.f32.xlu0 %v1488_v49 }
  0x8a   :  { %207 = vadd.xlane.f32.xlu0 %v1494_v51  ;;  %312 = vadd.xlane.f32.xlu1 %v261_v50  ;;  %v274_v50 = vmul.f32 %v1378_v12, %v1378_v12 }
  0x8e   :  { %314 = vadd.xlane.f32.xlu0 %v262_v52  ;;  %316 = vadd.xlane.f32.xlu1 %v263_v53  ;;  %v275_v52 = vmul.f32 %v1386_v15, %v1386_v15  ;;  %v276_v53 = vmul.f32 %v1384_v14, %v1384_v14 }
  0x92   :  { %318 = vadd.xlane.f32.xlu0 %v264_v54  ;;  %320 = vadd.xlane.f32.xlu1 %v265_v55  ;;  %v277_v54 = vmul.f32 %v1392_v17, %v1392_v17  ;;  %v278_v55 = vmul.f32 %v1390_v16, %v1390_v16 }
  0x96   :  { %322 = vadd.xlane.f32.xlu0 %v266_v56  ;;  %324 = vadd.xlane.f32.xlu1 %v267_v57  ;;  %v279_v56 = vmul.f32 %v1398_v19, %v1398_v19  ;;  %v280_v57 = vmul.f32 %v1396_v18, %v1396_v18 }
  0x9a   :  { %326 = vadd.xlane.f32.xlu0 %v268_v58  ;;  %328 = vadd.xlane.f32.xlu1 %v269_v59 }
  0x9e   :  { %330 = vadd.xlane.f32.xlu0 %v270_v60  ;;  %332 = vadd.xlane.f32.xlu1 %v271_v61  ;;  %v281_v60 = vmul.f32 %v1404_v21, %v1404_v21  ;;  %v282_v61 = vmul.f32 %v1402_v20, %v1402_v20 }
  0xa2   :  { %334 = vadd.xlane.f32.xlu0 %v272_v62  ;;  %336 = vadd.xlane.f32.xlu1 %v273_v63 }
  0xa6   :  { %338 = vadd.xlane.f32.xlu0 %v274_v50  ;;  %340 = vadd.xlane.f32.xlu1 %v275_v52  ;;  %v283_v50 = vmul.f32 %v1410_v23, %v1410_v23  ;;  %v284_v52 = vmul.f32 %v1408_v22, %v1408_v22 }
  0xaa   :  { %342 = vadd.xlane.f32.xlu0 %v276_v53  ;;  %344 = vadd.xlane.f32.xlu1 %v277_v54 }
  0xae   :  { %346 = vadd.xlane.f32.xlu0 %v278_v55  ;;  %348 = vadd.xlane.f32.xlu1 %v279_v56  ;;  %v285_v55 = vmul.f32 %v1416_v25, %v1416_v25  ;;  %v286_v56 = vmul.f32 %v1414_v24, %v1414_v24 }
  0xaf   :  { %v1535_v58 = vpop.xlane.xlu1 %111  ;;  %v1537_v59 = vpop.xlane.xlu0 %107 }
  0xb2   :  { %350 = vadd.xlane.f32.xlu0 %v280_v57  ;;  %352 = vadd.xlane.f32.xlu1 %v281_v60 }
  0xb3   :  { %v1543_v62 = vpop.xlane.xlu1 %113  ;;  %v1545_v63 = vpop.xlane.xlu0 %109 }
  0xb6   :  { %354 = vadd.xlane.f32.xlu0 %v282_v61  ;;  %356 = vadd.xlane.f32.xlu1 %v283_v50  ;;  %v287_v61 = vmul.f32 %v1422_v27, %v1422_v27  ;;  %v288_v50 = vmul.f32 %v1420_v26, %v1420_v26 }
  0xb7   :  { %v1551_v53 = vpop.xlane.xlu1 %117  ;;  %v1553_v54 = vpop.xlane.xlu0 %115 }
  0xba   :  { %358 = vadd.xlane.f32.xlu0 %v284_v52  ;;  %360 = vadd.xlane.f32.xlu1 %v285_v55  ;;  %v289_v52 = vmul.f32 %v1428_v29, %v1428_v29  ;;  %v290_v55 = vmul.f32 %v1426_v28, %v1426_v28 }
  0xbb   :  { %v1559_v57 = vpop.xlane.xlu1 %121  ;;  %v1561_v60 = vpop.xlane.xlu0 %119 }
  0xbe   :  { %362 = vadd.xlane.f32.xlu0 %v286_v56  ;;  %364 = vadd.xlane.f32.xlu1 %v287_v61  ;;  %v291_v56 = vmul.f32 %v1434_v31, %v1434_v31  ;;  %v292_v61 = vmul.f32 %v1432_v30, %v1432_v30 }
  0xbf   :  { %v1567_v23 = vpop.xlane.xlu1 %125  ;;  %v1569_v25 = vpop.xlane.xlu0 %123 }
  0xc2   :  { %366 = vadd.xlane.f32.xlu0 %v288_v50  ;;  %368 = vadd.xlane.f32.xlu1 %v289_v52  ;;  %v293_v50 = vmul.f32 %v1440_v33, %v1440_v33  ;;  %v294_v52 = vmul.f32 %v1438_v32, %v1438_v32 }
  0xc3   :  { %v1575_v24 = vpop.xlane.xlu1 %129  ;;  %v1577_v27 = vpop.xlane.xlu0 %127 }
  0xc4   :  { %v1757_v2 = vmul.f32 0.0078125, %v1577_v27 }
  0xc6   :  { %370 = vadd.xlane.f32.xlu0 %v290_v55  ;;  %372 = vadd.xlane.f32.xlu1 %v291_v56  ;;  %v295_v55 = vmul.f32 %v1446_v35, %v1446_v35  ;;  %v296_v56 = vmul.f32 %v1444_v34, %v1444_v34  ;;  %2487 = vst [vmem:[#allocation64_spill] sm:$0xff] %v1757_v2 }
  0xc7   :  { %v1583_v26 = vpop.xlane.xlu1 %133  ;;  %v1585_v29 = vpop.xlane.xlu0 %131  ;;  %v1801_v0 = vmul.f32 %v1757_v2, %v1757_v2 }
  0xc8   :  { %v1770_v4 = vmul.f32 0.0078125, %v1583_v26 }
  0xca   :  { %374 = vadd.xlane.f32.xlu0 %v292_v61  ;;  %376 = vadd.xlane.f32.xlu1 %v293_v50  ;;  %v297_v61 = vmul.f32 %v1452_v37, %v1452_v37  ;;  %v298_v50 = vmul.f32 %v1450_v36, %v1450_v36  ;;  %2488 = vst [vmem:[#allocation65_spill] sm:$0xff] %v1770_v4 }
  0xcb   :  { %v1591_v28 = vpop.xlane.xlu1 %137  ;;  %v1593_v31 = vpop.xlane.xlu0 %135 }
  0xcc   :  { %v1786_v6 = vmul.f32 0.0078125, %v1591_v28 }
  0xce   :  { %378 = vadd.xlane.f32.xlu0 %v294_v52  ;;  %380 = vadd.xlane.f32.xlu1 %v295_v55  ;;  %v299_v52 = vmul.f32 %v1458_v39, %v1458_v39  ;;  %v300_v55 = vmul.f32 %v1456_v38, %v1456_v38  ;;  %2489 = vst [vmem:[#allocation66_spill] sm:$0xff] %v1786_v6 }
  0xcf   :  { %v1599_v30 = vpop.xlane.xlu1 %141  ;;  %v1601_v33 = vpop.xlane.xlu0 %139 }
  0xd0   :  { %v1809_v26 = vmul.f32 0.0078125, %v1601_v33 }
  0xd2   :  { %382 = vadd.xlane.f32.xlu0 %v296_v56  ;;  %384 = vadd.xlane.f32.xlu1 %v297_v61  ;;  %v301_v56 = vmul.f32 %v1464_v41, %v1464_v41  ;;  %v302_v61 = vmul.f32 %v1462_v40, %v1462_v40  ;;  %2492 = vst [vmem:[#allocation69_spill] sm:$0xff] %v1809_v26 }
  0xd3   :  { %v1607_v32 = vpop.xlane.xlu1 %145  ;;  %v1609_v35 = vpop.xlane.xlu0 %143  ;;  %v1859_v10 = vmul.f32 %v1809_v26, %v1809_v26 }
  0xd4   :  { %v1837_v2 = vmul.f32 0.0078125, %v1609_v35 }
  0xd6   :  { %386 = vadd.xlane.f32.xlu0 %v298_v50  ;;  %388 = vadd.xlane.f32.xlu1 %v299_v52  ;;  %v303_v50 = vmul.f32 %v1470_v43, %v1470_v43  ;;  %v304_v52 = vmul.f32 %v1468_v42, %v1468_v42  ;;  %v307_v42 = vmul.f32 %v1482_v47, %v1482_v47 }
  0xd7   :  { %v1615_v34 = vpop.xlane.xlu1 %149  ;;  %v1617_v37 = vpop.xlane.xlu0 %147  ;;  %2494 = vst [vmem:[#allocation71_spill] sm:$0xff] %v1837_v2 }
  0xd8   :  { %v1849_v33 = vmul.f32 0.0078125, %v1617_v37 }
  0xda   :  { %390 = vadd.xlane.f32.xlu0 %v300_v55  ;;  %392 = vadd.xlane.f32.xlu1 %v301_v56  ;;  %v305_v55 = vmul.f32 %v1476_v45, %v1476_v45  ;;  %v306_v56 = vmul.f32 %v1474_v44, %v1474_v44  ;;  %v309_v44 = vmul.f32 %v1488_v49, %v1488_v49 }
  0xdb   :  { %v1623_v36 = vpop.xlane.xlu1 %153  ;;  %v1625_v39 = vpop.xlane.xlu0 %151  ;;  %2496 = vst [vmem:[#allocation73_spill] sm:$0xff] %v1849_v33  ;;  %v1899_v35 = vmul.f32 %v1849_v33, %v1849_v33 }
  0xde   :  { %394 = vadd.xlane.f32.xlu0 %v302_v61  ;;  %396 = vadd.xlane.f32.xlu1 %v303_v50  ;;  %v308_v61 = vmul.f32 %v1480_v46, %v1480_v46  ;;  %v311_v46 = vmul.f32 %v1494_v51, %v1494_v51 }
  0xdf   :  { %v1631_v38 = vpop.xlane.xlu1 %157  ;;  %v1633_v41 = vpop.xlane.xlu0 %155 }
  0xe0   :  { %v1889_v37 = vmul.f32 0.0078125, %v1633_v41 }
  0xe2   :  { %398 = vadd.xlane.f32.xlu0 %v304_v52  ;;  %400 = vadd.xlane.f32.xlu1 %v305_v55  ;;  %v310_v52 = vmul.f32 %v1486_v48, %v1486_v48  ;;  %2500 = vst [vmem:[#allocation77_spill] sm:$0xff] %v1889_v37  ;;  %v1939_v22 = vmul.f32 %v1889_v37, %v1889_v37 }
  0xe3   :  { %v1639_v40 = vpop.xlane.xlu1 %161  ;;  %v1641_v43 = vpop.xlane.xlu0 %159 }
  0xe4   :  { %v1913_v18 = vmul.f32 0.0078125, %v1641_v43 }
  0xe6   :  { %402 = vadd.xlane.f32.xlu0 %v306_v56  ;;  %404 = vadd.xlane.f32.xlu1 %v307_v42  ;;  %2502 = vst [vmem:[#allocation79_spill] sm:$0xff] %v1913_v18 }
  0xe7   :  { %v1647_v50 = vpop.xlane.xlu1 %165  ;;  %v1649_v45 = vpop.xlane.xlu0 %163 }
  0xe8   :  { %2469 = vst [vmem:[#allocation46_spill] sm:$0xff] %v1649_v45  ;;  %v1926_v33 = vmul.f32 0.0078125, %v1647_v50 }
  0xea   :  { %406 = vadd.xlane.f32.xlu0 %v308_v61  ;;  %408 = vadd.xlane.f32.xlu1 %v309_v44  ;;  %v1674_v44 = vmul.f32 0.0078125, %v1535_v58  ;;  %2504 = vst [vmem:[#allocation80_spill] sm:$0xff] %v1926_v33 }
  0xeb   :  { %v1655_v55 = vpop.xlane.xlu1 %169  ;;  %v1657_v47 = vpop.xlane.xlu0 %167 }
  0xec   :  { %2470 = vst [vmem:[#allocation47_spill] sm:$0xff] %v1657_v47  ;;  %2474 = vst [vmem:[#allocation51_spill] sm:$0xff] %v1674_v44  ;;  %v1677_v47 = vmul.f32 0.0078125, %v1537_v59  ;;  %v1697_v58 = vmul.f32 %v1674_v44, %v1674_v44  ;;  %v1721_v44 = vmul.f32 0.0078125, %v1561_v60  ;;  %v1942_v19 = vmul.f32 0.0078125, %v1655_v55 }
  0xee   :  { %410 = vadd.xlane.f32.xlu0 %v310_v52  ;;  %412 = vadd.xlane.f32.xlu1 %v311_v46  ;;  %2475 = vst [vmem:[#allocation52_spill] sm:$0xff] %v1677_v47  ;;  %v1684_v46 = vmul.f32 0.0078125, %v1543_v62  ;;  %2480 = vst [vmem:[#allocation57_spill] sm:$0xff] %v1697_v58  ;;  %v1703_v62 = vmul.f32 %v1677_v47, %v1677_v47 }
  0xef   :  { %v1661_v56 = vpop.xlane.xlu1 %173  ;;  %v1663_v42 = vpop.xlane.xlu0 %171  ;;  %2483 = vst [vmem:[#allocation60_spill] sm:$0xff] %v1721_v44  ;;  %v2505_v21 = vld [vmem:[#allocation46_spill] sm:$0xff]  ;;  %2509 = vst [vmem:[#allocation82_spill] sm:$0xff] %v1942_v19 }
  0xf0   :  { %2477 = vst [vmem:[#allocation54_spill] sm:$0xff] %v1684_v46  ;;  %v1716_v58 = vmul.f32 %v1684_v46, %v1684_v46  ;;  %v1746_v46 = vmul.f32 0.0078125, %v1575_v24  ;;  %v1765_v24 = vmul.f32 %v1721_v44, %v1721_v44  ;;  %v1797_v44 = vmul.f32 0.0078125, %v1593_v31 }
  0xf1   :  { %v1817_v31 = vmul.f32 %v1770_v4, %v1770_v4  ;;  %v1846_v4 = vmul.f32 0.0078125, %v1615_v34  ;;  %v1962_v16 = vmul.f32 0.0078125, %v1661_v56  ;;  %v1965_v20 = vmul.f32 0.0078125, %v1663_v42 }
  0xf2   :  { %2486 = vst [vmem:[#allocation63_spill] sm:$0xff] %v1746_v46  ;;  %2490 = vst [vmem:[#allocation67_spill] sm:$0xff] %v1797_v44  ;;  %v1983_v42 = vmul.f32 %v1942_v19, %v1942_v19 }
  0xf3   :  { %v1665_v45 = vpop.xlane.xlu1 %177  ;;  %v1667_v49 = vpop.xlane.xlu0 %175  ;;  %2495 = vst [vmem:[#allocation72_spill] sm:$0xff] %v1846_v4  ;;  %v1893_v26 = vmul.f32 %v1846_v4, %v1846_v4  ;;  %v2513_v17 = vld [vmem:[#allocation47_spill] sm:$0xff]  ;;  %2516 = vst [vmem:[#allocation84_spill] sm:$0xff] %v1962_v16  ;;  %v2002_v56 = vmul.f32 %v1962_v16, %v1962_v16 }
  0xf4   :  { %2471 = vst [vmem:[#allocation48_spill] sm:$0xff] %v1665_v45  ;;  %v1687_v45 = vmul.f32 0.0078125, %v1545_v63  ;;  %v1706_v63 = vmul.f32 0.0078125, %v1559_v57  ;;  %2517 = vst [vmem:[#allocation85_spill] sm:$0xff] %v1965_v20 }
  0xf5   :  { %2522 = vst [vmem:[#allocation88_spill] sm:$0xff] %v1983_v42  ;;  %2529 = vst [vmem:[#allocation91_spill] sm:$0xff] %v2002_v56  ;;  %v2008_v42 = vmul.f32 %v1965_v20, %v1965_v20 }
  0xf6   :  { %2481 = vst [vmem:[#allocation58_spill] sm:$0xff] %v1706_v63  ;;  %v1725_v57 = vmul.f32 %v1687_v45, %v1687_v45 }
  0xf7   :  { %v1669_v61 = vpop.xlane.xlu1 %181  ;;  %v1671_v48 = vpop.xlane.xlu0 %179  ;;  %2531 = vst [vmem:[#allocation92_spill] sm:$0xff] %v2008_v42 }
  0xf8   :  { %2472 = vst [vmem:[#allocation49_spill] sm:$0xff] %v1669_v61  ;;  %2473 = vst [vmem:[#allocation50_spill] sm:$0xff] %v1671_v48  ;;  %v1690_v61 = vmul.f32 0.0078125, %v1551_v53  ;;  %v1693_v48 = vmul.f32 0.0078125, %v1553_v54  ;;  %v1733_v54 = vmul.f32 0.0078125, %v1569_v25  ;;  %v1752_v25 = vmul.f32 %v1706_v63, %v1706_v63 }
  0xfa   :  { %2478 = vst [vmem:[#allocation55_spill] sm:$0xff] %v1690_v61  ;;  %2479 = vst [vmem:[#allocation56_spill] sm:$0xff] %v1693_v48  ;;  %v1737_v47 = vmul.f32 %v1690_v61, %v1690_v61  ;;  %v1743_v59 = vmul.f32 %v1693_v48, %v1693_v48  ;;  %v1773_v48 = vmul.f32 0.0078125, %v1585_v29  ;;  %v1783_v63 = vmul.f32 %v1733_v54, %v1733_v54 }
  0xfb   :  { %v1679_v51 = vpop.xlane.xlu1 %185  ;;  %v1681_v52 = vpop.xlane.xlu0 %183  ;;  %2485 = vst [vmem:[#allocation62_spill] sm:$0xff] %v1733_v54  ;;  %v1792_v29 = vmul.f32 %v1746_v46, %v1746_v46  ;;  %v1832_v46 = vmul.f32 %v1786_v6, %v1786_v6  ;;  %v1862_v6 = vmul.f32 0.0078125, %v1623_v36  ;;  %v1881_v36 = vmul.f32 %v1837_v2, %v1837_v2  ;;  %v2523_v55 = vld [vmem:[#allocation48_spill] sm:$0xff] }
  0xfc   :  { %2476 = vst [vmem:[#allocation53_spill] sm:$0xff] %v1681_v52  ;;  %v1823_v28 = vmul.f32 %v1773_v48, %v1773_v48  ;;  %v1929_v2 = vmul.f32 0.0078125, %v2505_v21 }
  0xfd   :  { %2497 = vst [vmem:[#allocation74_spill] sm:$0xff] %v1862_v6  ;;  %v1908_v41 = vmul.f32 %v1862_v6, %v1862_v6  ;;  %v1957_v6 = vmul.f32 %v1913_v18, %v1913_v18 }
  0xfe   :  { %2506 = vst [vmem:[#allocation46_spill] sm:$0xff] %v1929_v2 }
  0xff   :  { %v1708_v52 = vpop.xlane.xlu1 %189  ;;  %v1710_v53 = vpop.xlane.xlu0 %187 }
 0x100   :  { %2482 = vst [vmem:[#allocation59_spill] sm:$0xff] %v1710_v53  ;;  %v1730_v53 = vmul.f32 0.0078125, %v1567_v23  ;;  %v1841_v23 = vmul.f32 %v1797_v44, %v1797_v44  ;;  %v1886_v44 = vmul.f32 0.0078125, %v1631_v38 }
 0x102   :  { %2484 = vst [vmem:[#allocation61_spill] sm:$0xff] %v1730_v53  ;;  %v1777_v27 = vmul.f32 %v1730_v53, %v1730_v53  ;;  %v1806_v53 = vmul.f32 0.0078125, %v1599_v30  ;;  %v1826_v30 = vmul.f32 0.0078125, %v1607_v32  ;;  %2499 = vst [vmem:[#allocation76_spill] sm:$0xff] %v1886_v44  ;;  %v1933_v43 = vmul.f32 %v1886_v44, %v1886_v44 }
 0x103   :  { %v1759_v60 = vpop.xlane.xlu1 %193  ;;  %v1761_v61 = vpop.xlane.xlu0 %191 }
 0x104   :  { %2491 = vst [vmem:[#allocation68_spill] sm:$0xff] %v1806_v53  ;;  %2493 = vst [vmem:[#allocation70_spill] sm:$0xff] %v1826_v30  ;;  %v1853_v12 = vmul.f32 %v1806_v53, %v1806_v53  ;;  %v1872_v14 = vmul.f32 %v1826_v30, %v1826_v30  ;;  %v1877_v53 = vmul.f32 0.0078125, %v1625_v39  ;;  %v1902_v30 = vmul.f32 0.0078125, %v1639_v40 }
 0x105   :  { %2507 = vst [vmem:[#allocation81_spill] sm:$0xff] %v1933_v43  ;;  %v1953_v43 = vmul.f32 0.0078125, %v2513_v17  ;;  %v1971_v17 = vmul.f32 %v1926_v33, %v1926_v33  ;;  %v2532_v33 = vld [vmem:[#allocation49_spill] sm:$0xff] }
 0x106   :  { %2498 = vst [vmem:[#allocation75_spill] sm:$0xff] %v1877_v53  ;;  %2501 = vst [vmem:[#allocation78_spill] sm:$0xff] %v1902_v30  ;;  %v1921_v40 = vmul.f32 %v1877_v53, %v1877_v53  ;;  %v1948_v21 = vmul.f32 %v1902_v30, %v1902_v30  ;;  %v1977_v53 = vmul.f32 %v1929_v2, %v1929_v2  ;;  %v2011_v19 = vmul.f32 0.0078125, %v2532_v33  ;;  %v2538_v33 = vld [vmem:[#allocation50_spill] sm:$0xff] }
 0x107   :  { %v1811_v8 = vpop.xlane.xlu1 %197  ;;  %v1813_v54 = vpop.xlane.xlu0 %195  ;;  %2514 = vst [vmem:[#allocation47_spill] sm:$0xff] %v1953_v43  ;;  %2518 = vst [vmem:[#allocation86_spill] sm:$0xff] %v1971_v17  ;;  %v1989_v17 = vmul.f32 0.0078125, %v1667_v49  ;;  %v1995_v38 = vmul.f32 %v1953_v43, %v1953_v43  ;;  %v2026_v42 = vmul.f32 0.0078125, %v2538_v33  ;;  %v2544_v33 = vld [vmem:[#allocation53_spill] sm:$0xff]  ;;  %v2549_v18 = vld [vmem:[#allocation59_spill] sm:$0xff] }
 0x108   :  { %2511 = vst [vmem:[#allocation83_spill] sm:$0xff] %v1948_v21  ;;  %2520 = vst [vmem:[#allocation87_spill] sm:$0xff] %v1977_v53  ;;  %v1986_v21 = vmul.f32 0.0078125, %v2523_v55  ;;  %v2029_v53 = vmul.f32 0.0078125, %v1679_v51  ;;  %v2037_v16 = vmul.f32 %v2011_v19, %v2011_v19 }
 0x109   :  { %2525 = vst [vmem:[#allocation89_spill] sm:$0xff] %v1989_v17  ;;  %2527 = vst [vmem:[#allocation90_spill] sm:$0xff] %v1995_v38  ;;  %v2023_v55 = vmul.f32 %v1989_v17, %v1989_v17  ;;  %v2051_v17 = vmul.f32 0.0078125, %v1708_v52 }
 0x10a   :  { %2524 = vst [vmem:[#allocation48_spill] sm:$0xff] %v1986_v21  ;;  %2533 = vst [vmem:[#allocation49_spill] sm:$0xff] %v2011_v19  ;;  %v2017_v56 = vmul.f32 %v1986_v21, %v1986_v21 }
 0x10b   :  { %v1864_v32 = vpop.xlane.xlu1 %201  ;;  %v1866_v34 = vpop.xlane.xlu0 %199  ;;  %2537 = vst [vmem:[#allocation94_spill] sm:$0xff] %v2023_v55  ;;  %2539 = vst [vmem:[#allocation50_spill] sm:$0xff] %v2026_v42 }
 0x10c   :  { %2535 = vst [vmem:[#allocation93_spill] sm:$0xff] %v2017_v56  ;;  %2540 = vst [vmem:[#allocation95_spill] sm:$0xff] %v2029_v53  ;;  %v2042_v56 = vmul.f32 0.0078125, %v2544_v33  ;;  %v2055_v33 = vmul.f32 %v2029_v53, %v2029_v53 }
 0x10d   :  { %2547 = vst [vmem:[#allocation53_spill] sm:$0xff] %v2051_v17 }
 0x10e   :  { %v2062_v21 = vmul.f32 %v2042_v56, %v2042_v56 }
 0x10f   :  { %v1915_v39 = vpop.xlane.xlu1 %205  ;;  %v1917_v4 = vpop.xlane.xlu0 %203 }
 0x113   :  { %v1967_v37 = vpop.xlane.xlu0 %207  ;;  %v313_v50 = vpop.xlane.xlu1 %312 }
 0x114   :  { %v414_v44 = vmul.f32 0.0078125, %v313_v50 }
 0x116   :  { %v516_v2 = vsub.f32 %v414_v44, %v1703_v62 }
 0x117   :  { %v315_v30 = vpop.xlane.xlu0 %314  ;;  %v317_v38 = vpop.xlane.xlu1 %316 }
 0x118   :  { %v567_v44 = vmax.f32 %v516_v2, 0.0  ;;  %v415_v62 = vmul.f32 0.0078125, %v315_v30  ;;  %v416_v50 = vmul.f32 0.0078125, %v317_v38  ;;  %v2541_v38 = vld [vmem:[#allocation57_spill] sm:$0xff] }
 0x119   :  { %2545 = vst [vmem:[#allocation57_spill] sm:$0xff] %v2042_v56 }
 0x11a   :  { %v618_v2 = vadd.f32 1e-05, %v567_v44  ;;  %v517_v30 = vsub.f32 %v415_v62, %v1725_v57  ;;  %v518_v43 = vsub.f32 %v416_v50, %v2541_v38  ;;  %v2046_v50 = vmul.f32 %v2026_v42, %v2026_v42 }
 0x11b   :  { %v319_v51 = vpop.xlane.xlu0 %318  ;;  %v321_v55 = vpop.xlane.xlu1 %320  ;;  %v2065_v42 = vmul.f32 0.0078125, %v2549_v18  ;;  %v2075_v18 = vmul.f32 0.0078125, %v1759_v60 }
 0x11c   :  { %1101 = vrsqrt.f32 %v618_v2  ;;  %v568_v44 = vmax.f32 %v517_v30, 0.0  ;;  %v569_v57 = vmax.f32 %v518_v43, 0.0  ;;  %v417_v62 = vmul.f32 0.0078125, %v319_v51 }
 0x11d   :  { %v418_v49 = vmul.f32 0.0078125, %v321_v55  ;;  %2550 = vst [vmem:[#allocation59_spill] sm:$0xff] %v2065_v42  ;;  %v2072_v51 = vmul.f32 %v2051_v17, %v2051_v17  ;;  %2552 = vst [vmem:[#allocation96_spill] sm:$0xff] %v2075_v18 }
 0x11e   :  { %v619_v19 = vadd.f32 1e-05, %v568_v44  ;;  %v620_v2 = vadd.f32 1e-05, %v569_v57  ;;  %v519_v43 = vsub.f32 %v417_v62, %v1716_v58 }
 0x11f   :  { %v520_v52 = vsub.f32 %v418_v49, %v1743_v59  ;;  %v323_v55 = vpop.xlane.xlu0 %322  ;;  %v325_v38 = vpop.xlane.xlu1 %324  ;;  %v824_v49 = vld [vmem:[#allocation5 + $0x10] sm:$0xff] }
 0x120   :  { %1103 = vrsqrt.f32 %v619_v19  ;;  %v570_v20 = vmax.f32 %v519_v43, 0.0  ;;  %v419_v44 = vmul.f32 0.0078125, %v323_v55  ;;  %v420_v57 = vmul.f32 0.0078125, %v325_v38 }
 0x121   :  { %1105 = vrsqrt.f32 %v620_v2  ;;  %v571_v53 = vmax.f32 %v520_v52, 0.0  ;;  %v2083_v43 = vmul.f32 %v2065_v42, %v2065_v42 }
 0x122   :  { %v621_v30 = vadd.f32 1e-05, %v570_v20  ;;  %v521_v59 = vsub.f32 %v419_v44, %v1737_v47  ;;  %v522_v19 = vsub.f32 %v420_v57, %v1765_v24  ;;  %v2088_v47 = vmul.f32 0.0078125, %v1761_v61 }
 0x123   :  { %v622_v2 = vadd.f32 1e-05, %v571_v53  ;;  %v327_v52 = vpop.xlane.xlu0 %326  ;;  %v329_v56 = vpop.xlane.xlu1 %328  ;;  %v2091_v24 = vmul.f32 0.0078125, %v1811_v8  ;;  %v2095_v57 = vmul.f32 %v2075_v18, %v2075_v18  ;;  %v2105_v61 = vmul.f32 0.0078125, %v1866_v34 }
 0x124   :  { %1107 = vrsqrt.f32 %v621_v30  ;;  %v572_v60 = vmax.f32 %v521_v59, 0.0  ;;  %v573_v20 = vmax.f32 %v522_v19, 0.0  ;;  %v421_v58 = vmul.f32 0.0078125, %v327_v52  ;;  %2555 = vst [vmem:[#allocation97_spill] sm:$0xff] %v2088_v47 }
 0x125   :  { %2556 = vst [vmem:[#allocation98_spill] sm:$0xff] %v2091_v24  ;;  %1109 = vrsqrt.f32 %v622_v2  ;;  %v422_v44 = vmul.f32 0.0078125, %v329_v56  ;;  %v2099_v30 = vmul.f32 0.0078125, %v1813_v54  ;;  %v2102_v59 = vmul.f32 0.0078125, %v1864_v32  ;;  %2559 = vst [vmem:[#allocation101_spill] sm:$0xff] %v2105_v61  ;;  %v822_v32 = vld [vmem:[#allocation5] sm:$0xff] }
 0x126   :  { %v623_v38 = vadd.f32 1e-05, %v572_v60  ;;  %v624_v53 = vadd.f32 1e-05, %v573_v20  ;;  %v523_v62 = vsub.f32 %v421_v58, %v1752_v25  ;;  %v2110_v25 = vmul.f32 %v2088_v47, %v2088_v47 }
 0x127   :  { %2557 = vst [vmem:[#allocation99_spill] sm:$0xff] %v2099_v30  ;;  %2558 = vst [vmem:[#allocation100_spill] sm:$0xff] %v2102_v59  ;;  %v524_v8 = vsub.f32 %v422_v44, %v1783_v63  ;;  %v331_v56 = vpop.xlane.xlu0 %330  ;;  %v333_v19 = vpop.xlane.xlu1 %332  ;;  %v2114_v54 = vmul.f32 %v2091_v24, %v2091_v24  ;;  %v2560_v63 = vld [vmem:[#allocation52_spill] sm:$0xff]  ;;  %v2127_v24 = vmul.f32 %v2102_v59, %v2102_v59 }
 0x128   :  { %1111 = vrsqrt.f32 %v623_v38  ;;  %v574_v2 = vmax.f32 %v523_v62, 0.0  ;;  %v423_v52 = vmul.f32 0.0078125, %v331_v56  ;;  %v424_v60 = vmul.f32 0.0078125, %v333_v19 }
 0x129   :  { %v1102_v20 = vpop.eup %1101  ;;  %1113 = vrsqrt.f32 %v624_v53  ;;  %v575_v34 = vmax.f32 %v524_v8, 0.0  ;;  %v2561_v58 = vsub.f32 %v1344_v1, %v2560_v63  ;;  %v2123_v19 = vmul.f32 %v2099_v30, %v2099_v30  ;;  %v924_v8 = vld [vmem:[#allocation7] sm:$0xff] }
 0x12a   :  { %v625_v38 = vadd.f32 1e-05, %v574_v2  ;;  %v525_v62 = vsub.f32 %v423_v52, %v1777_v27  ;;  %v526_v56 = vsub.f32 %v424_v60, %v1801_v0  ;;  %v2131_v53 = vmul.f32 %v2105_v61, %v2105_v61 }
 0x12b   :  { %v771_v44 = vmul.f32 %v1102_v20, %v2561_v58  ;;  %v626_v1 = vadd.f32 1e-05, %v575_v34  ;;  %v335_v20 = vpop.xlane.xlu0 %334  ;;  %v337_v2 = vpop.xlane.xlu1 %336  ;;  %v2134_v60 = vmul.f32 0.0078125, %v1915_v39  ;;  %v823_v58 = vld [vmem:[#allocation5 + $0x8] sm:$0xff]  ;;  %v2562_v61 = vsub.f32 %v1350_v3, %v1687_v45  ;;  %v2564_v39 = vld [vmem:[#allocation51_spill] sm:$0xff] }
 0x12c   :  { %1115 = vrsqrt.f32 %v625_v38  ;;  %v576_v27 = vmax.f32 %v525_v62, 0.0  ;;  %v577_v0 = vmax.f32 %v526_v56, 0.0  ;;  %v425_v59 = vmul.f32 0.0078125, %v335_v20  ;;  %v925_v38 = vld [vmem:[#allocation7 + $0x8] sm:$0xff]  ;;  %v2563_v62 = vld [vmem:[#allocation12_spill] sm:$0xff] }
 0x12d   :  { %v873_v63 = vmul.f32 %v822_v32, %v771_v44  ;;  %v1104_v52 = vpop.eup %1103  ;;  %1117 = vrsqrt.f32 %v626_v1  ;;  %v426_v30 = vmul.f32 0.0078125, %v337_v2  ;;  %v2140_v44 = vmul.f32 0.0078125, %v1917_v4  ;;  %v926_v45 = vld [vmem:[#allocation7 + $0x10] sm:$0xff] }
 0x12e   :  { %v1106_v18 = vpop.eup %1105  ;;  %v772_v34 = vmul.f32 %v1104_v52, %v2562_v61  ;;  %v627_v47 = vadd.f32 1e-05, %v576_v27  ;;  %v628_v32 = vadd.f32 1e-05, %v577_v0  ;;  %v2565_v56 = vsub.f32 %v2563_v62, %v2564_v39  ;;  %v825_v0 = vld [vmem:[#allocation5 + $0x18] sm:$0xff]  ;;  %v2566_v39 = vld [vmem:[#allocation13_spill] sm:$0xff] }
 0x12f   :  { %v975_v17 = vadd.f32 %v924_v8, %v873_v63  ;;  %v527_v1 = vsub.f32 %v425_v59, %v1792_v29  ;;  %v528_v20 = vsub.f32 %v426_v30, %v1823_v28  ;;  %v339_v8 = vpop.xlane.xlu0 %338  ;;  %v341_v2 = vpop.xlane.xlu1 %340  ;;  %v2567_v29 = vld [vmem:[#allocation54_spill] sm:$0xff]  ;;  %v826_v30 = vld [vmem:[#allocation5 + $0x20] sm:$0xff] }
 0x130   :  { %v773_v42 = vmul.f32 %v1106_v18, %v2565_v56  ;;  %v874_v3 = vmul.f32 %v823_v58, %v772_v34  ;;  %1119 = vrsqrt.f32 %v627_v47  ;;  %v427_v61 = vmul.f32 0.0078125, %v339_v8  ;;  %v927_v34 = vld [vmem:[#allocation7 + $0x18] sm:$0xff]  ;;  %v2569_v56 = vld [vmem:[#allocation56_spill] sm:$0xff] }
 0x131   :  { %1026 = vst [vmem:[#allocation8] sm:$0xff] %v975_v17  ;;  %v428_v63 = vmul.f32 0.0078125, %v341_v2  ;;  %v1108_v27 = vpop.eup %1107  ;;  %1121 = vrsqrt.f32 %v628_v32  ;;  %v578_v52 = vmax.f32 %v527_v1, 0.0  ;;  %v579_v55 = vmax.f32 %v528_v20, 0.0  ;;  %v928_v2 = vld [vmem:[#allocation7 + $0x20] sm:$0xff] }
 0x132   :  { %v875_v4 = vmul.f32 %v824_v49, %v773_v42  ;;  %v1110_v62 = vpop.eup %1109  ;;  %v976_v18 = vadd.f32 %v925_v38, %v874_v3  ;;  %v2568_v59 = vsub.f32 %v2566_v39, %v2567_v29  ;;  %v529_v17 = vsub.f32 %v427_v61, %v1817_v31 }
 0x133   :  { %v530_v58 = vsub.f32 %v428_v63, %v1841_v23  ;;  %v2570_v42 = vsub.f32 %v1356_v5, %v2569_v56  ;;  %v629_v32 = vadd.f32 1e-05, %v578_v52  ;;  %v630_v1 = vadd.f32 1e-05, %v579_v55  ;;  %v343_v20 = vpop.xlane.xlu0 %342  ;;  %v345_v8 = vpop.xlane.xlu1 %344  ;;  %v2571_v63 = vld [vmem:[#allocation14_spill] sm:$0xff] }
 0x134   :  { %v774_v28 = vmul.f32 %v1108_v27, %v2568_v59  ;;  %v977_v47 = vadd.f32 %v926_v45, %v875_v4  ;;  %1027 = vst [vmem:[#allocation8 + $0x8] sm:$0xff] %v976_v18  ;;  %v580_v3 = vmax.f32 %v529_v17, 0.0  ;;  %v429_v39 = vmul.f32 0.0078125, %v343_v20  ;;  %v827_v45 = vld [vmem:[#allocation5 + $0x28] sm:$0xff]  ;;  %v2572_v4 = vld [vmem:[#allocation55_spill] sm:$0xff] }
 0x135   :  { %v775_v49 = vmul.f32 %v1110_v62, %v2570_v42  ;;  %v581_v27 = vmax.f32 %v530_v58, 0.0  ;;  %v1112_v29 = vpop.eup %1111  ;;  %v2157_v23 = vmul.f32 %v2134_v60, %v2134_v60  ;;  %1123 = vrsqrt.f32 %v629_v32  ;;  %v828_v62 = vld [vmem:[#allocation5 + $0x30] sm:$0xff]  ;;  %v2574_v17 = vld [vmem:[#allocation60_spill] sm:$0xff] }
 0x136   :  { %v876_v38 = vmul.f32 %v825_v0, %v774_v28  ;;  %1028 = vst [vmem:[#allocation8 + $0x10] sm:$0xff] %v977_v47  ;;  %v430_v5 = vmul.f32 0.0078125, %v345_v8  ;;  %v1114_v61 = vpop.eup %1113  ;;  %v2573_v52 = vsub.f32 %v2571_v63, %v2572_v4  ;;  %1125 = vrsqrt.f32 %v630_v1  ;;  %v929_v28 = vld [vmem:[#allocation7 + $0x28] sm:$0xff]  ;;  %v930_v32 = vld [vmem:[#allocation7 + $0x30] sm:$0xff] }
 0x137   :  { %v877_v31 = vmul.f32 %v826_v30, %v775_v49  ;;  %v631_v18 = vadd.f32 1e-05, %v580_v3  ;;  %v2575_v58 = vsub.f32 %v1362_v7, %v2574_v17  ;;  %v632_v47 = vadd.f32 1e-05, %v581_v27  ;;  %v347_v42 = vpop.xlane.xlu0 %346  ;;  %v349_v49 = vpop.xlane.xlu1 %348  ;;  %v932_v17 = vld [vmem:[#allocation7 + $0x40] sm:$0xff] }
 0x138   :  { %v978_v55 = vadd.f32 %v927_v34, %v876_v38  ;;  %v776_v0 = vmul.f32 %v1112_v29, %v2573_v52  ;;  %v531_v30 = vsub.f32 %v429_v39, %v1832_v46  ;;  %v532_v20 = vsub.f32 %v430_v5, %v1859_v10  ;;  %v2577_v46 = vld [vmem:[#allocation58_spill] sm:$0xff]  ;;  %v931_v10 = vld [vmem:[#allocation7 + $0x38] sm:$0xff] }
 0x139   :  { %v979_v59 = vadd.f32 %v928_v2, %v877_v31  ;;  %v777_v56 = vmul.f32 %v1114_v61, %v2575_v58  ;;  %1127 = vrsqrt.f32 %v631_v18  ;;  %v431_v8 = vmul.f32 0.0078125, %v347_v42  ;;  %v1116_v1 = vpop.eup %1115  ;;  %v829_v2 = vld [vmem:[#allocation5 + $0x38] sm:$0xff]  ;;  %v2576_v31 = vld [vmem:[#allocation15_spill] sm:$0xff] }
 0x13a   :  { %1029 = vst [vmem:[#allocation8 + $0x18] sm:$0xff] %v978_v55  ;;  %v878_v34 = vmul.f32 %v827_v45, %v776_v0  ;;  %1129 = vrsqrt.f32 %v632_v47  ;;  %v582_v3 = vmax.f32 %v531_v30, 0.0  ;;  %v432_v7 = vmul.f32 0.0078125, %v349_v49  ;;  %v1118_v29 = vpop.eup %1117  ;;  %v830_v55 = vld [vmem:[#allocation5 + $0x40] sm:$0xff]  ;;  %v2579_v5 = vld [vmem:[#allocation62_spill] sm:$0xff]  ;;  %v831_v49 = vld [vmem:[#allocation5 + $0x48] sm:$0xff] }
 0x13b   :  { %1030 = vst [vmem:[#allocation8 + $0x20] sm:$0xff] %v979_v59  ;;  %v879_v38 = vmul.f32 %v828_v62, %v777_v56  ;;  %v2578_v39 = vsub.f32 %v2576_v31, %v2577_v46  ;;  %v583_v45 = vmax.f32 %v532_v20, 0.0  ;;  %v533_v63 = vsub.f32 %v431_v8, %v1853_v12  ;;  %v351_v59 = vpop.xlane.xlu0 %350  ;;  %v353_v30 = vpop.xlane.xlu1 %352  ;;  %v2581_v8 = vld [vmem:[#allocation16_spill] sm:$0xff] }
 0x13c   :  { %v980_v27 = vadd.f32 %v929_v28, %v878_v34  ;;  %v2580_v52 = vsub.f32 %v1368_v9, %v2579_v5  ;;  %v633_v62 = vadd.f32 1e-05, %v582_v3  ;;  %v534_v18 = vsub.f32 %v432_v7, %v1881_v36  ;;  %v832_v3 = vld [vmem:[#allocation5 + $0x50] sm:$0xff] }
 0x13d   :  { %v778_v61 = vmul.f32 %v1116_v1, %v2578_v39  ;;  %v981_v4 = vadd.f32 %v930_v32, %v879_v38  ;;  %v634_v58 = vadd.f32 1e-05, %v583_v45  ;;  %v584_v56 = vmax.f32 %v533_v63, 0.0  ;;  %v1120_v42 = vpop.eup %1119  ;;  %v2582_v1 = vld [vmem:[#allocation61_spill] sm:$0xff]  ;;  %v934_v63 = vld [vmem:[#allocation7 + $0x50] sm:$0xff] }
 0x13e   :  { %v779_v0 = vmul.f32 %v1118_v29, %v2580_v52  ;;  %1031 = vst [vmem:[#allocation8 + $0x28] sm:$0xff] %v980_v27  ;;  %v433_v47 = vmul.f32 0.0078125, %v351_v59  ;;  %1131 = vrsqrt.f32 %v633_v62  ;;  %v585_v34 = vmax.f32 %v534_v18, 0.0  ;;  %v1122_v9 = vpop.eup %1121  ;;  %v933_v29 = vld [vmem:[#allocation7 + $0x48] sm:$0xff]  ;;  %v2584_v27 = vld [vmem:[#allocation64_spill] sm:$0xff]  ;;  %v833_v59 = vld [vmem:[#allocation5 + $0x58] sm:$0xff] }
 0x13f   :  { %v880_v28 = vmul.f32 %v829_v2, %v778_v61  ;;  %1032 = vst [vmem:[#allocation8 + $0x30] sm:$0xff] %v981_v4  ;;  %v434_v32 = vmul.f32 0.0078125, %v353_v30  ;;  %v2583_v36 = vsub.f32 %v2581_v8, %v2582_v1  ;;  %1133 = vrsqrt.f32 %v634_v58  ;;  %v357_v5 = vpop.xlane.xlu1 %356 }
 0x140   :  { %v881_v12 = vmul.f32 %v830_v55, %v779_v0  ;;  %v635_v2 = vadd.f32 1e-05, %v584_v56  ;;  %v2585_v31 = vsub.f32 %v1374_v11, %v2584_v27  ;;  %v636_v39 = vadd.f32 1e-05, %v585_v34  ;;  %v355_v55 = vpop.xlane.xlu0 %354 }
 0x141   :  { %v982_v20 = vadd.f32 %v931_v10, %v880_v28  ;;  %v780_v38 = vmul.f32 %v1120_v42, %v2583_v36  ;;  %v535_v61 = vsub.f32 %v433_v47, %v1872_v14  ;;  %v536_v4 = vsub.f32 %v434_v32, %v1899_v35  ;;  %v2586_v35 = vld [vmem:[#allocation17_spill] sm:$0xff]  ;;  %v2587_v47 = vld [vmem:[#allocation63_spill] sm:$0xff] }
 0x142   :  { %v983_v7 = vadd.f32 %v932_v17, %v881_v12  ;;  %v781_v46 = vmul.f32 %v1122_v9, %v2585_v31  ;;  %1135 = vrsqrt.f32 %v635_v2  ;;  %v435_v10 = vmul.f32 0.0078125, %v355_v55  ;;  %v1124_v18 = vpop.eup %1123  ;;  %v834_v12 = vld [vmem:[#allocation5 + $0x60] sm:$0xff]  ;;  %v935_v9 = vld [vmem:[#allocation7 + $0x58] sm:$0xff] }
 0x143   :  { %1033 = vst [vmem:[#allocation8 + $0x38] sm:$0xff] %v982_v20  ;;  %v882_v45 = vmul.f32 %v831_v49, %v780_v38  ;;  %1137 = vrsqrt.f32 %v636_v39  ;;  %v586_v0 = vmax.f32 %v535_v61, 0.0  ;;  %v436_v62 = vmul.f32 0.0078125, %v357_v5  ;;  %v1126_v58 = vpop.eup %1125  ;;  %v361_v38 = vpop.xlane.xlu1 %360  ;;  %v2590_v39 = vld [vmem:[#allocation18_spill] sm:$0xff]  ;;  %v2591_v61 = vld [vmem:[#allocation65_spill] sm:$0xff] }
 0x144   :  { %1034 = vst [vmem:[#allocation8 + $0x40] sm:$0xff] %v983_v7  ;;  %v883_v52 = vmul.f32 %v832_v3, %v781_v46  ;;  %v2185_v11 = vmul.f32 %v2140_v44, %v2140_v44  ;;  %v587_v28 = vmax.f32 %v536_v4, 0.0  ;;  %v537_v17 = vsub.f32 %v435_v10, %v1893_v26  ;;  %v359_v32 = vpop.xlane.xlu0 %358  ;;  %v936_v7 = vld [vmem:[#allocation7 + $0x60] sm:$0xff]  ;;  %v937_v4 = vld [vmem:[#allocation7 + $0x68] sm:$0xff] }
 0x145   :  { %v984_v14 = vadd.f32 %v933_v29, %v882_v45  ;;  %v2588_v30 = vsub.f32 %v2586_v35, %v2587_v47  ;;  %v637_v49 = vadd.f32 1e-05, %v586_v0  ;;  %v538_v34 = vsub.f32 %v436_v62, %v1921_v40  ;;  %v835_v29 = vld [vmem:[#allocation5 + $0x68] sm:$0xff]  ;;  %v2593_v10 = vld [vmem:[#allocation67_spill] sm:$0xff] }
 0x146   :  { %v985_v56 = vadd.f32 %v934_v63, %v883_v52  ;;  %v2589_v20 = vsub.f32 %v1380_v13, %v1773_v48  ;;  %v638_v1 = vadd.f32 1e-05, %v587_v28  ;;  %v588_v36 = vmax.f32 %v537_v17, 0.0  ;;  %v1128_v3 = vpop.eup %1127  ;;  %v836_v13 = vld [vmem:[#allocation5 + $0x70] sm:$0xff]  ;;  %v938_v28 = vld [vmem:[#allocation7 + $0x70] sm:$0xff] }
 0x147   :  { %v782_v42 = vmul.f32 %v1124_v18, %v2588_v30  ;;  %1035 = vst [vmem:[#allocation8 + $0x48] sm:$0xff] %v984_v14  ;;  %v437_v26 = vmul.f32 0.0078125, %v359_v32  ;;  %1139 = vrsqrt.f32 %v637_v49  ;;  %v589_v27 = vmax.f32 %v538_v34, 0.0  ;;  %v1130_v40 = vpop.eup %1129 }
 0x148   :  { %v783_v8 = vmul.f32 %v1126_v58, %v2589_v20  ;;  %1036 = vst [vmem:[#allocation8 + $0x50] sm:$0xff] %v985_v56  ;;  %v438_v31 = vmul.f32 0.0078125, %v361_v38  ;;  %v2592_v55 = vsub.f32 %v2590_v39, %v2591_v61  ;;  %1141 = vrsqrt.f32 %v638_v1  ;;  %v363_v18 = vpop.xlane.xlu0 %362  ;;  %v365_v58 = vpop.xlane.xlu1 %364  ;;  %v2596_v20 = vld [vmem:[#allocation66_spill] sm:$0xff]  ;;  %v838_v1 = vld [vmem:[#allocation5 + $0x80] sm:$0xff] }
 0x149   :  { %v884_v2 = vmul.f32 %v833_v59, %v782_v42  ;;  %v639_v48 = vadd.f32 1e-05, %v588_v36  ;;  %v2594_v5 = vsub.f32 %v1386_v15, %v2593_v10  ;;  %v640_v0 = vadd.f32 1e-05, %v589_v27 }
 0x14a   :  { %v885_v46 = vmul.f32 %v834_v12, %v783_v8  ;;  %v784_v45 = vmul.f32 %v1128_v3, %v2592_v55  ;;  %v539_v62 = vsub.f32 %v437_v26, %v1908_v41  ;;  %v540_v17 = vsub.f32 %v438_v31, %v1939_v22  ;;  %v837_v41 = vld [vmem:[#allocation5 + $0x78] sm:$0xff]  ;;  %v2598_v26 = vld [vmem:[#allocation81_spill] sm:$0xff] }
 0x14b   :  { %v986_v63 = vadd.f32 %v935_v9, %v884_v2  ;;  %v785_v52 = vmul.f32 %v1130_v40, %v2594_v5  ;;  %1143 = vrsqrt.f32 %v639_v48  ;;  %v439_v47 = vmul.f32 0.0078125, %v363_v18  ;;  %v1132_v30 = vpop.eup %1131  ;;  %v2595_v9 = vld [vmem:[#allocation19_spill] sm:$0xff]  ;;  %v939_v2 = vld [vmem:[#allocation7 + $0x78] sm:$0xff]  ;;  %v2602_v5 = vld [vmem:[#allocation20_spill] sm:$0xff] }
 0x14c   :  { %v987_v14 = vadd.f32 %v936_v7, %v885_v46  ;;  %v886_v59 = vmul.f32 %v835_v29, %v784_v45  ;;  %1145 = vrsqrt.f32 %v640_v0  ;;  %v590_v35 = vmax.f32 %v539_v62, 0.0  ;;  %v1134_v34 = vpop.eup %1133  ;;  %v367_v3 = vpop.xlane.xlu0 %366  ;;  %v2600_v7 = vld [vmem:[#allocation69_spill] sm:$0xff]  ;;  %v940_v45 = vld [vmem:[#allocation7 + $0x80] sm:$0xff] }
 0x14d   :  { %1037 = vst [vmem:[#allocation8 + $0x58] sm:$0xff] %v986_v63  ;;  %v887_v56 = vmul.f32 %v836_v13, %v785_v52  ;;  %v2204_v15 = vmul.f32 0.0078125, %v1967_v37  ;;  %v591_v12 = vmax.f32 %v540_v17, 0.0  ;;  %v440_v49 = vmul.f32 0.0078125, %v365_v58  ;;  %v2599_v37 = vld [vmem:[#allocation21_spill] sm:$0xff]  ;;  %v369_v39 = vpop.xlane.xlu1 %368  ;;  %v839_v13 = vld [vmem:[#allocation5 + $0x88] sm:$0xff] }
 0x14e   :  { %1038 = vst [vmem:[#allocation8 + $0x60] sm:$0xff] %v987_v14  ;;  %v988_v42 = vadd.f32 %v937_v4, %v886_v59  ;;  %v2597_v22 = vsub.f32 %v2595_v9, %v2596_v20  ;;  %v641_v36 = vadd.f32 1e-05, %v590_v35  ;;  %v541_v38 = vsub.f32 %v439_v47, %v2598_v26  ;;  %v2603_v52 = vld [vmem:[#allocation68_spill] sm:$0xff]  ;;  %v840_v18 = vld [vmem:[#allocation5 + $0x90] sm:$0xff]  ;;  %v941_v59 = vld [vmem:[#allocation7 + $0x88] sm:$0xff] }
 0x14f   :  { %v989_v32 = vadd.f32 %v938_v28, %v887_v56  ;;  %v2601_v29 = vsub.f32 %v2599_v37, %v2600_v7  ;;  %v642_v31 = vadd.f32 1e-05, %v591_v12  ;;  %v542_v40 = vsub.f32 %v440_v49, %v1957_v6  ;;  %v1136_v61 = vpop.eup %1135  ;;  %v2605_v28 = vld [vmem:[#allocation23_spill] sm:$0xff]  ;;  %v942_v49 = vld [vmem:[#allocation7 + $0x90] sm:$0xff] }
 0x150   :  { %v786_v8 = vmul.f32 %v1132_v30, %v2597_v22  ;;  %1039 = vst [vmem:[#allocation8 + $0x68] sm:$0xff] %v988_v42  ;;  %v441_v46 = vmul.f32 0.0078125, %v367_v3  ;;  %1147 = vrsqrt.f32 %v641_v36  ;;  %v592_v48 = vmax.f32 %v541_v38, 0.0  ;;  %v1138_v4 = vpop.eup %1137  ;;  %v2606_v17 = vld [vmem:[#allocation71_spill] sm:$0xff]  ;;  %v371_v42 = vpop.xlane.xlu0 %370  ;;  %v841_v38 = vld [vmem:[#allocation5 + $0x98] sm:$0xff] }
 0x151   :  { %v787_v27 = vmul.f32 %v1134_v34, %v2601_v29  ;;  %1040 = vst [vmem:[#allocation8 + $0x70] sm:$0xff] %v989_v32  ;;  %v442_v63 = vmul.f32 0.0078125, %v369_v39  ;;  %v2604_v0 = vsub.f32 %v2602_v5, %v2603_v52  ;;  %1149 = vrsqrt.f32 %v642_v31  ;;  %v2608_v47 = vld [vmem:[#allocation83_spill] sm:$0xff]  ;;  %v373_v20 = vpop.xlane.xlu1 %372  ;;  %v2610_v29 = vld [vmem:[#allocation22_spill] sm:$0xff] }
 0x152   :  { %v888_v55 = vmul.f32 %v837_v41, %v786_v8  ;;  %v593_v14 = vmax.f32 %v542_v40, 0.0  ;;  %v2607_v58 = vsub.f32 %v2605_v28, %v2606_v17  ;;  %v643_v35 = vadd.f32 1e-05, %v592_v48  ;;  %v2609_v32 = vld [vmem:[#allocation87_spill] sm:$0xff]  ;;  %v2614_v48 = vld [vmem:[#allocation25_spill] sm:$0xff]  ;;  %v2617_v52 = vld [vmem:[#allocation90_spill] sm:$0xff] }
 0x153   :  { %v889_v10 = vmul.f32 %v838_v1, %v787_v27  ;;  %v788_v62 = vmul.f32 %v1136_v61, %v2604_v0  ;;  %v543_v30 = vsub.f32 %v441_v46, %v2608_v47  ;;  %v544_v9 = vsub.f32 %v442_v63, %v2609_v32  ;;  %v2611_v27 = vld [vmem:[#allocation70_spill] sm:$0xff]  ;;  %v842_v46 = vld [vmem:[#allocation5 + $0xa0] sm:$0xff]  ;;  %v2615_v63 = vld [vmem:[#allocation73_spill] sm:$0xff] }
 0x154   :  { %v990_v6 = vadd.f32 %v939_v2, %v888_v55  ;;  %v789_v56 = vmul.f32 %v1138_v4, %v2607_v58  ;;  %v644_v34 = vadd.f32 1e-05, %v593_v14  ;;  %1151 = vrsqrt.f32 %v643_v35  ;;  %v1140_v36 = vpop.eup %1139  ;;  %v2613_v61 = vld [vmem:[#allocation86_spill] sm:$0xff]  ;;  %v843_v28 = vld [vmem:[#allocation5 + $0xa8] sm:$0xff]  ;;  %v945_v32 = vld [vmem:[#allocation7 + $0xa8] sm:$0xff] }
 0x155   :  { %v991_v41 = vadd.f32 %v940_v45, %v889_v10  ;;  %v890_v12 = vmul.f32 %v839_v13, %v788_v62  ;;  %v594_v8 = vmax.f32 %v543_v30, 0.0  ;;  %v443_v1 = vmul.f32 0.0078125, %v371_v42  ;;  %v1142_v37 = vpop.eup %1141  ;;  %v375_v45 = vpop.xlane.xlu0 %374  ;;  %v943_v13 = vld [vmem:[#allocation7 + $0x98] sm:$0xff]  ;;  %v2618_v47 = vld [vmem:[#allocation24_spill] sm:$0xff] }
 0x156   :  { %1041 = vst [vmem:[#allocation8 + $0x78] sm:$0xff] %v990_v6  ;;  %v891_v22 = vmul.f32 %v840_v18, %v789_v56  ;;  %1153 = vrsqrt.f32 %v644_v34  ;;  %v595_v3 = vmax.f32 %v544_v9, 0.0  ;;  %v444_v2 = vmul.f32 0.0078125, %v373_v20  ;;  %v377_v18 = vpop.xlane.xlu1 %376  ;;  %v2619_v30 = vld [vmem:[#allocation72_spill] sm:$0xff]  ;;  %v2621_v9 = vld [vmem:[#allocation27_spill] sm:$0xff] }
 0x157   :  { %1042 = vst [vmem:[#allocation8 + $0x80] sm:$0xff] %v991_v41  ;;  %v992_v26 = vadd.f32 %v941_v59, %v890_v12  ;;  %v2612_v31 = vsub.f32 %v2610_v29, %v2611_v27  ;;  %v645_v39 = vadd.f32 1e-05, %v594_v8  ;;  %v545_v55 = vsub.f32 %v443_v1, %v2613_v61  ;;  %v944_v59 = vld [vmem:[#allocation7 + $0xa0] sm:$0xff]  ;;  %v844_v12 = vld [vmem:[#allocation5 + $0xb0] sm:$0xff]  ;;  %v2622_v20 = vld [vmem:[#allocation75_spill] sm:$0xff] }
 0x158   :  { %v993_v7 = vadd.f32 %v942_v49, %v891_v22  ;;  %v2616_v4 = vsub.f32 %v2614_v48, %v2615_v63  ;;  %v646_v5 = vadd.f32 1e-05, %v595_v3  ;;  %v546_v0 = vsub.f32 %v444_v2, %v2617_v52  ;;  %v1144_v14 = vpop.eup %1143  ;;  %v2625_v29 = vld [vmem:[#allocation92_spill] sm:$0xff] }
 0x159   :  { %v790_v40 = vmul.f32 %v1140_v36, %v2612_v31  ;;  %1043 = vst [vmem:[#allocation8 + $0x88] sm:$0xff] %v992_v26  ;;  %v445_v62 = vmul.f32 0.0078125, %v375_v45  ;;  %1155 = vrsqrt.f32 %v645_v39  ;;  %v596_v17 = vmax.f32 %v545_v55, 0.0  ;;  %v1146_v56 = vpop.eup %1145  ;;  %v2624_v36 = vld [vmem:[#allocation88_spill] sm:$0xff]  ;;  %v845_v45 = vld [vmem:[#allocation5 + $0xb8] sm:$0xff] }
 0x15a   :  { %v791_v10 = vmul.f32 %v1142_v37, %v2616_v4  ;;  %1044 = vst [vmem:[#allocation8 + $0x90] sm:$0xff] %v993_v7  ;;  %v446_v58 = vmul.f32 0.0078125, %v377_v18  ;;  %v2620_v42 = vsub.f32 %v2618_v47, %v2619_v30  ;;  %1157 = vrsqrt.f32 %v646_v5  ;;  %v946_v37 = vld [vmem:[#allocation7 + $0xb0] sm:$0xff]  ;;  %v381_v31 = vpop.xlane.xlu1 %380  ;;  %v2627_v5 = vld [vmem:[#allocation74_spill] sm:$0xff] }
 0x15b   :  { %v892_v6 = vmul.f32 %v841_v38, %v790_v40  ;;  %v597_v49 = vmax.f32 %v546_v0, 0.0  ;;  %v2623_v22 = vsub.f32 %v2621_v9, %v2622_v20  ;;  %v647_v1 = vadd.f32 1e-05, %v596_v17  ;;  %v379_v38 = vpop.xlane.xlu0 %378  ;;  %v2630_v17 = vld [vmem:[#allocation29_spill] sm:$0xff]  ;;  %v2633_v30 = vld [vmem:[#allocation94_spill] sm:$0xff] }
 0x15c   :  { %v893_v35 = vmul.f32 %v842_v46, %v791_v10  ;;  %v792_v41 = vmul.f32 %v1144_v14, %v2620_v42  ;;  %v547_v26 = vsub.f32 %v445_v62, %v2624_v36  ;;  %v548_v27 = vsub.f32 %v446_v58, %v2625_v29  ;;  %v2626_v10 = vld [vmem:[#allocation26_spill] sm:$0xff]  ;;  %v846_v62 = vld [vmem:[#allocation5 + $0xc0] sm:$0xff]  ;;  %v2631_v58 = vld [vmem:[#allocation77_spill] sm:$0xff] }
 0x15d   :  { %v994_v34 = vadd.f32 %v943_v13, %v892_v6  ;;  %v793_v8 = vmul.f32 %v1146_v56, %v2623_v22  ;;  %v648_v7 = vadd.f32 1e-05, %v597_v49  ;;  %1159 = vrsqrt.f32 %v647_v1  ;;  %v1148_v61 = vpop.eup %1147  ;;  %v2629_v14 = vld [vmem:[#allocation91_spill] sm:$0xff]  ;;  %v2634_v36 = vld [vmem:[#allocation93_spill] sm:$0xff] }
 0x15e   :  { %v995_v3 = vadd.f32 %v944_v59, %v893_v35  ;;  %v894_v2 = vmul.f32 %v843_v28, %v792_v41  ;;  %v598_v46 = vmax.f32 %v547_v26, 0.0  ;;  %v447_v39 = vmul.f32 0.0078125, %v379_v38  ;;  %v1150_v63 = vpop.eup %1149  ;;  %v947_v28 = vld [vmem:[#allocation7 + $0xb8] sm:$0xff] }
 0x15f   :  { %1045 = vst [vmem:[#allocation8 + $0x98] sm:$0xff] %v994_v34  ;;  %v895_v40 = vmul.f32 %v844_v12, %v793_v8  ;;  %1161 = vrsqrt.f32 %v648_v7  ;;  %v599_v13 = vmax.f32 %v548_v27, 0.0  ;;  %v448_v48 = vmul.f32 0.0078125, %v381_v31  ;;  %v383_v59 = vpop.xlane.xlu0 %382  ;;  %v385_v12 = vpop.xlane.xlu1 %384  ;;  %v948_v34 = vld [vmem:[#allocation7 + $0xc0] sm:$0xff]  ;;  %v847_v8 = vld [vmem:[#allocation5 + $0xc8] sm:$0xff]  ;;  %v848_v27 = vld [vmem:[#allocation5 + $0xd0] sm:$0xff] }
 0x160   :  { %1046 = vst [vmem:[#allocation8 + $0xa0] sm:$0xff] %v995_v3  ;;  %v996_v55 = vadd.f32 %v945_v32, %v894_v2  ;;  %v2628_v52 = vsub.f32 %v2626_v10, %v2627_v5  ;;  %v649_v18 = vadd.f32 1e-05, %v598_v46  ;;  %v549_v6 = vsub.f32 %v447_v39, %v2629_v14  ;;  %v2635_v2 = vld [vmem:[#allocation28_spill] sm:$0xff] }
 0x161   :  { %v997_v4 = vadd.f32 %v946_v37, %v895_v40  ;;  %v2632_v56 = vsub.f32 %v2630_v17, %v2631_v58  ;;  %v650_v47 = vadd.f32 1e-05, %v599_v13  ;;  %v550_v42 = vsub.f32 %v448_v48, %v2633_v30  ;;  %v1152_v20 = vpop.eup %1151  ;;  %v2636_v37 = vld [vmem:[#allocation76_spill] sm:$0xff]  ;;  %v2641_v58 = vld [vmem:[#allocation30_spill] sm:$0xff]  ;;  %v850_v30 = vld [vmem:[#allocation5 + $0xe0] sm:$0xff] }
 0x162   :  { %v794_v0 = vmul.f32 %v1148_v61, %v2628_v52  ;;  %1047 = vst [vmem:[#allocation8 + $0xa8] sm:$0xff] %v996_v55  ;;  %v449_v41 = vmul.f32 0.0078125, %v383_v59  ;;  %1163 = vrsqrt.f32 %v649_v18  ;;  %v600_v32 = vmax.f32 %v549_v6, 0.0  ;;  %v949_v61 = vld [vmem:[#allocation7 + $0xc8] sm:$0xff]  ;;  %v950_v52 = vld [vmem:[#allocation7 + $0xd0] sm:$0xff] }
 0x163   :  { %v795_v35 = vmul.f32 %v1150_v63, %v2632_v56  ;;  %1048 = vst [vmem:[#allocation8 + $0xb0] sm:$0xff] %v997_v4  ;;  %v450_v9 = vmul.f32 0.0078125, %v385_v12  ;;  %1165 = vrsqrt.f32 %v650_v47  ;;  %v601_v1 = vmax.f32 %v550_v42, 0.0  ;;  %v1154_v38 = vpop.eup %1153  ;;  %v387_v46 = vpop.xlane.xlu0 %386  ;;  %v2638_v55 = vld [vmem:[#allocation31_spill] sm:$0xff]  ;;  %v2642_v56 = vld [vmem:[#allocation78_spill] sm:$0xff] }
 0x164   :  { %v896_v49 = vmul.f32 %v845_v45, %v794_v0  ;;  %v551_v26 = vsub.f32 %v449_v41, %v2634_v36  ;;  %v2637_v7 = vsub.f32 %v2635_v2, %v2636_v37  ;;  %v651_v31 = vadd.f32 1e-05, %v600_v32  ;;  %v2639_v45 = vld [vmem:[#allocation79_spill] sm:$0xff]  ;;  %v389_v10 = vpop.xlane.xlu1 %388  ;;  %v2644_v32 = vld [vmem:[#allocation33_spill] sm:$0xff] }
 0x165   :  { %v897_v22 = vmul.f32 %v846_v62, %v795_v35  ;;  %v552_v40 = vsub.f32 %v450_v9, %v2046_v50  ;;  %v2640_v13 = vsub.f32 %v2638_v55, %v2639_v45  ;;  %v652_v63 = vadd.f32 1e-05, %v601_v1  ;;  %v849_v50 = vld [vmem:[#allocation5 + $0xd8] sm:$0xff]  ;;  %v852_v55 = vld [vmem:[#allocation5 + $0xf0] sm:$0xff] }
 0x166   :  { %v998_v3 = vadd.f32 %v947_v28, %v896_v49  ;;  %v796_v29 = vmul.f32 %v1152_v20, %v2637_v7  ;;  %v602_v4 = vmax.f32 %v551_v26, 0.0  ;;  %1167 = vrsqrt.f32 %v651_v31  ;;  %v1156_v18 = vpop.eup %1155  ;;  %v2645_v9 = vld [vmem:[#allocation46_spill] sm:$0xff]  ;;  %v851_v7 = vld [vmem:[#allocation5 + $0xe8] sm:$0xff] }
 0x167   :  { %v999_v39 = vadd.f32 %v948_v34, %v897_v22  ;;  %v797_v48 = vmul.f32 %v1154_v38, %v2640_v13  ;;  %v603_v0 = vmax.f32 %v552_v40, 0.0  ;;  %v451_v62 = vmul.f32 0.0078125, %v387_v46  ;;  %v1158_v28 = vpop.eup %1157  ;;  %v391_v12 = vpop.xlane.xlu0 %390  ;;  %v951_v34 = vld [vmem:[#allocation7 + $0xd8] sm:$0xff]  ;;  %v952_v26 = vld [vmem:[#allocation7 + $0xe0] sm:$0xff]  ;;  %v2648_v46 = vld [vmem:[#allocation80_spill] sm:$0xff] }
 0x168   :  { %1049 = vst [vmem:[#allocation8 + $0xb8] sm:$0xff] %v998_v3  ;;  %v898_v5 = vmul.f32 %v847_v8, %v796_v29  ;;  %1169 = vrsqrt.f32 %v652_v63  ;;  %v653_v6 = vadd.f32 1e-05, %v602_v4  ;;  %v452_v59 = vmul.f32 0.0078125, %v389_v10  ;;  %v393_v1 = vpop.xlane.xlu1 %392  ;;  %v953_v4 = vld [vmem:[#allocation7 + $0xe8] sm:$0xff] }
 0x169   :  { %1050 = vst [vmem:[#allocation8 + $0xc0] sm:$0xff] %v999_v39  ;;  %v899_v14 = vmul.f32 %v848_v27, %v797_v48  ;;  %v2643_v35 = vsub.f32 %v2641_v58, %v2642_v56  ;;  %v654_v42 = vadd.f32 1e-05, %v603_v0  ;;  %v553_v41 = vsub.f32 %v451_v62, %v2037_v16  ;;  %v2650_v10 = vld [vmem:[#allocation35_spill] sm:$0xff]  ;;  %v853_v58 = vld [vmem:[#allocation5 + $0xf8] sm:$0xff] }
 0x16a   :  { %v1000_v17 = vadd.f32 %v949_v61, %v898_v5  ;;  %v2646_v20 = vsub.f32 %v2644_v32, %v2645_v9  ;;  %1171 = vrsqrt.f32 %v653_v6  ;;  %v554_v8 = vsub.f32 %v452_v59, %v2062_v21  ;;  %v1160_v2 = vpop.eup %1159  ;;  %v2647_v21 = vld [vmem:[#allocation32_spill] sm:$0xff]  ;;  %v2651_v5 = vld [vmem:[#allocation47_spill] sm:$0xff] }
 0x16b   :  { %v798_v47 = vmul.f32 %v1156_v18, %v2643_v35  ;;  %v1001_v49 = vadd.f32 %v950_v52, %v899_v14  ;;  %1173 = vrsqrt.f32 %v654_v42  ;;  %v604_v38 = vmax.f32 %v553_v41, 0.0  ;;  %v395_v48 = vpop.xlane.xlu0 %394  ;;  %v954_v6 = vld [vmem:[#allocation7 + $0xf0] sm:$0xff]  ;;  %v2653_v42 = vld [vmem:[#allocation34_spill] sm:$0xff] }
 0x16c   :  { %v799_v22 = vmul.f32 %v1158_v28, %v2646_v20  ;;  %1051 = vst [vmem:[#allocation8 + $0xc8] sm:$0xff] %v1000_v17  ;;  %v453_v3 = vmul.f32 0.0078125, %v391_v12  ;;  %v2264_v16 = vmul.f32 %v2204_v15, %v2204_v15  ;;  %v605_v29 = vmax.f32 %v554_v8, 0.0  ;;  %v1162_v31 = vpop.eup %1161  ;;  %v397_v14 = vpop.xlane.xlu1 %396  ;;  %v2654_v41 = vld [vmem:[#allocation82_spill] sm:$0xff]  ;;  %v2656_v8 = vld [vmem:[#allocation37_spill] sm:$0xff] }
 0x16d   :  { %v900_v36 = vmul.f32 %v849_v50, %v798_v47  ;;  %1052 = vst [vmem:[#allocation8 + $0xd0] sm:$0xff] %v1001_v49  ;;  %v454_v27 = vmul.f32 0.0078125, %v393_v1  ;;  %v2649_v39 = vsub.f32 %v2647_v21, %v2648_v46  ;;  %v655_v45 = vadd.f32 1e-05, %v604_v38  ;;  %v854_v49 = vld [vmem:[#allocation5 + $0x100] sm:$0xff]  ;;  %v2657_v1 = vld [vmem:[#allocation85_spill] sm:$0xff] }
 0x16e   :  { %v901_v37 = vmul.f32 %v850_v30, %v799_v22  ;;  %v555_v13 = vsub.f32 %v453_v3, %v2055_v33  ;;  %v2652_v52 = vsub.f32 %v2650_v10, %v2651_v5  ;;  %v656_v62 = vadd.f32 1e-05, %v605_v29  ;;  %v955_v22 = vld [vmem:[#allocation7 + $0xf8] sm:$0xff] }
 0x16f   :  { %v1002_v40 = vadd.f32 %v951_v34, %v900_v36  ;;  %v800_v61 = vmul.f32 %v1160_v2, %v2649_v39  ;;  %v556_v18 = vsub.f32 %v454_v27, %v2083_v43  ;;  %1175 = vrsqrt.f32 %v655_v45  ;;  %v1164_v17 = vpop.eup %1163  ;;  %v399_v9 = vpop.xlane.xlu0 %398  ;;  %v2660_v45 = vld [vmem:[#allocation84_spill] sm:$0xff] }
 0x170   :  { %v1003_v63 = vadd.f32 %v952_v26, %v901_v37  ;;  %v801_v0 = vmul.f32 %v1162_v31, %v2652_v52  ;;  %v606_v59 = vmax.f32 %v555_v13, 0.0  ;;  %v455_v28 = vmul.f32 0.0078125, %v395_v48  ;;  %v1166_v47 = vpop.eup %1165  ;;  %v401_v2 = vpop.xlane.xlu1 %400  ;;  %v856_v48 = vld [vmem:[#allocation5 + $0x110] sm:$0xff]  ;;  %v957_v52 = vld [vmem:[#allocation7 + $0x108] sm:$0xff] }
 0x171   :  { %1053 = vst [vmem:[#allocation8 + $0xd8] sm:$0xff] %v1002_v40  ;;  %v902_v50 = vmul.f32 %v851_v7, %v800_v61  ;;  %1177 = vrsqrt.f32 %v656_v62  ;;  %v607_v56 = vmax.f32 %v556_v18, 0.0  ;;  %v456_v35 = vmul.f32 0.0078125, %v397_v14  ;;  %v956_v7 = vld [vmem:[#allocation7 + $0x100] sm:$0xff]  ;;  %v855_v40 = vld [vmem:[#allocation5 + $0x108] sm:$0xff]  ;;  %v2663_v62 = vld [vmem:[#allocation89_spill] sm:$0xff] }
 0x172   :  { %1054 = vst [vmem:[#allocation8 + $0xe0] sm:$0xff] %v1003_v63  ;;  %v903_v33 = vmul.f32 %v852_v55, %v801_v0  ;;  %v2655_v12 = vsub.f32 %v2653_v42, %v2654_v41  ;;  %v657_v34 = vadd.f32 1e-05, %v606_v59  ;;  %v557_v32 = vsub.f32 %v455_v28, %v2072_v51  ;;  %v2659_v55 = vld [vmem:[#allocation36_spill] sm:$0xff]  ;;  %v2662_v0 = vld [vmem:[#allocation39_spill] sm:$0xff] }
 0x173   :  { %v1004_v30 = vadd.f32 %v953_v4, %v902_v50  ;;  %v2658_v36 = vsub.f32 %v2656_v8, %v2657_v1  ;;  %v658_v38 = vadd.f32 1e-05, %v607_v56  ;;  %v558_v3 = vsub.f32 %v456_v35, %v2110_v25  ;;  %v1168_v31 = vpop.eup %1167  ;;  %v403_v10 = vpop.xlane.xlu0 %402  ;;  %v2666_v42 = vld [vmem:[#allocation48_spill] sm:$0xff] }
 0x174   :  { %v802_v43 = vmul.f32 %v1164_v17, %v2655_v12  ;;  %v1005_v20 = vadd.f32 %v954_v6, %v903_v33  ;;  %1179 = vrsqrt.f32 %v657_v34  ;;  %v608_v29 = vmax.f32 %v557_v32, 0.0  ;;  %v405_v59 = vpop.xlane.xlu1 %404  ;;  %v958_v33 = vld [vmem:[#allocation7 + $0x110] sm:$0xff]  ;;  %v959_v34 = vld [vmem:[#allocation7 + $0x118] sm:$0xff] }
 0x175   :  { %v803_v26 = vmul.f32 %v1166_v47, %v2658_v36  ;;  %1055 = vst [vmem:[#allocation8 + $0xe8] sm:$0xff] %v1004_v30  ;;  %v457_v27 = vmul.f32 0.0078125, %v399_v9  ;;  %1181 = vrsqrt.f32 %v658_v38  ;;  %v609_v21 = vmax.f32 %v558_v3, 0.0  ;;  %v1170_v39 = vpop.eup %1169  ;;  %v2665_v30 = vld [vmem:[#allocation38_spill] sm:$0xff]  ;;  %v2668_v32 = vld [vmem:[#allocation41_spill] sm:$0xff] }
 0x176   :  { %v904_v37 = vmul.f32 %v853_v58, %v802_v43  ;;  %1056 = vst [vmem:[#allocation8 + $0xf0] sm:$0xff] %v1005_v20  ;;  %v458_v46 = vmul.f32 0.0078125, %v401_v2  ;;  %v2661_v13 = vsub.f32 %v2659_v55, %v2660_v45  ;;  %v659_v63 = vadd.f32 1e-05, %v608_v29  ;;  %v857_v58 = vld [vmem:[#allocation5 + $0x118] sm:$0xff]  ;;  %v858_v43 = vld [vmem:[#allocation5 + $0x120] sm:$0xff] }
 0x177   :  { %v905_v51 = vmul.f32 %v854_v49, %v803_v26  ;;  %v559_v4 = vsub.f32 %v457_v27, %v2095_v57  ;;  %v2664_v18 = vsub.f32 %v2662_v0, %v2663_v62  ;;  %v660_v50 = vadd.f32 1e-05, %v609_v21  ;;  %v1172_v28 = vpop.eup %1171  ;;  %v2669_v9 = vld [vmem:[#allocation50_spill] sm:$0xff]  ;;  %v407_v36 = vpop.xlane.xlu0 %406  ;;  %v859_v21 = vld [vmem:[#allocation5 + $0x128] sm:$0xff]  ;;  %v2672_v45 = vld [vmem:[#allocation49_spill] sm:$0xff] }
 0x178   :  { %v1006_v61 = vadd.f32 %v955_v22, %v904_v37  ;;  %v804_v25 = vmul.f32 %v1168_v31, %v2661_v13  ;;  %v560_v6 = vsub.f32 %v458_v46, %v2123_v19  ;;  %1183 = vrsqrt.f32 %v659_v63  ;;  %v1174_v57 = vpop.eup %1173  ;;  %v960_v3 = vld [vmem:[#allocation7 + $0x120] sm:$0xff]  ;;  %v2671_v55 = vld [vmem:[#allocation40_spill] sm:$0xff]  ;;  %v2675_v0 = vld [vmem:[#allocation57_spill] sm:$0xff] }
 0x179   :  { %v1007_v5 = vadd.f32 %v956_v7, %v905_v51  ;;  %v805_v14 = vmul.f32 %v1170_v39, %v2664_v18  ;;  %v610_v56 = vmax.f32 %v559_v4, 0.0  ;;  %v459_v35 = vmul.f32 0.0078125, %v403_v10  ;;  %v409_v7 = vpop.xlane.xlu1 %408 }
 0x17a   :  { %1057 = vst [vmem:[#allocation8 + $0xf8] sm:$0xff] %v1006_v61  ;;  %v906_v17 = vmul.f32 %v855_v40, %v804_v25  ;;  %v2667_v41 = vsub.f32 %v2665_v30, %v2666_v42  ;;  %1185 = vrsqrt.f32 %v660_v50  ;;  %v611_v49 = vmax.f32 %v560_v6, 0.0 }
 0x17b   :  { %1058 = vst [vmem:[#allocation8 + $0x100] sm:$0xff] %v1007_v5  ;;  %v907_v47 = vmul.f32 %v856_v48, %v805_v14  ;;  %v2670_v20 = vsub.f32 %v2668_v32, %v2669_v9  ;;  %v661_v8 = vadd.f32 1e-05, %v610_v56  ;;  %v561_v1 = vsub.f32 %v459_v35, %v2114_v54  ;;  %v860_v48 = vld [vmem:[#allocation5 + $0x130] sm:$0xff]  ;;  %v411_v10 = vpop.xlane.xlu0 %410  ;;  %v961_v5 = vld [vmem:[#allocation7 + $0x128] sm:$0xff]  ;;  %v861_v56 = vld [vmem:[#allocation5 + $0x138] sm:$0xff] }
 0x17c   :  { %v806_v12 = vmul.f32 %v1172_v28, %v2667_v41  ;;  %v1008_v19 = vadd.f32 %v957_v52, %v906_v17  ;;  %v662_v2 = vadd.f32 1e-05, %v611_v49  ;;  %v460_v37 = vmul.f32 0.0078125, %v405_v59  ;;  %v1176_v51 = vpop.eup %1175  ;;  %v2674_v52 = vld [vmem:[#allocation43_spill] sm:$0xff]  ;;  %v962_v28 = vld [vmem:[#allocation7 + $0x130] sm:$0xff]  ;;  %v2677_v41 = vld [vmem:[#allocation42_spill] sm:$0xff] }
 0x17d   :  { %v807_v22 = vmul.f32 %v1174_v57, %v2670_v20  ;;  %v1009_v26 = vadd.f32 %v958_v33, %v907_v47  ;;  %1187 = vrsqrt.f32 %v661_v8  ;;  %v612_v27 = vmax.f32 %v561_v1, 0.0  ;;  %v413_v6 = vpop.xlane.xlu1 %412  ;;  %v862_v49 = vld [vmem:[#allocation5 + $0x140] sm:$0xff]  ;;  %v963_v9 = vld [vmem:[#allocation7 + $0x138] sm:$0xff] }
 0x17e   :  { %v908_v38 = vmul.f32 %v857_v58, %v806_v12  ;;  %1059 = vst [vmem:[#allocation8 + $0x108] sm:$0xff] %v1008_v19  ;;  %v461_v31 = vmul.f32 0.0078125, %v407_v36  ;;  %1189 = vrsqrt.f32 %v662_v2  ;;  %v562_v46 = vsub.f32 %v460_v37, %v2131_v53  ;;  %v1178_v39 = vpop.eup %1177  ;;  %v2678_v12 = vld [vmem:[#allocation95_spill] sm:$0xff]  ;;  %v2680_v20 = vld [vmem:[#allocation45_spill] sm:$0xff]  ;;  %v1203_v37 = vld [vmem:[#allocation2 + $0x150] sm:$0xff] }
 0x17f   :  { %v909_v29 = vmul.f32 %v858_v43, %v807_v22  ;;  %1060 = vst [vmem:[#allocation8 + $0x110] sm:$0xff] %v1009_v26  ;;  %v462_v54 = vmul.f32 0.0078125, %v409_v7  ;;  %v2673_v13 = vsub.f32 %v2671_v55, %v2672_v45  ;;  %v663_v63 = vadd.f32 1e-05, %v612_v27  ;;  %v2681_v22 = vld [vmem:[#allocation59_spill] sm:$0xff]  ;;  %v964_v26 = vld [vmem:[#allocation7 + $0x140] sm:$0xff] }
 0x180   :  { %v1010_v40 = vadd.f32 %v959_v34, %v908_v38  ;;  %v563_v4 = vsub.f32 %v461_v31, %v2127_v24  ;;  %v2676_v62 = vsub.f32 %v2674_v52, %v2675_v0  ;;  %v613_v14 = vmax.f32 %v562_v46, 0.0  ;;  %v2683_v7 = vld [vmem:[#allocation97_spill] sm:$0xff]  ;;  %v863_v27 = vld [vmem:[#allocation5 + $0x148] sm:$0xff] }
 0x181   :  { %v1011_v61 = vadd.f32 %v960_v3, %v909_v29  ;;  %v808_v25 = vmul.f32 %v1176_v51, %v2673_v13  ;;  %v564_v53 = vsub.f32 %v462_v54, %v2185_v11  ;;  %v463_v50 = vmul.f32 0.0078125, %v411_v10  ;;  %v1180_v58 = vpop.eup %1179  ;;  %v965_v13 = vld [vmem:[#allocation7 + $0x148] sm:$0xff]  ;;  %v1205_v0 = vld [vmem:[#allocation2 + $0x160] sm:$0xff] }
 0x182   :  { %1061 = vst [vmem:[#allocation8 + $0x118] sm:$0xff] %v1010_v40  ;;  %v809_v18 = vmul.f32 %v1178_v39, %v2676_v62  ;;  %1191 = vrsqrt.f32 %v663_v63  ;;  %v614_v17 = vmax.f32 %v563_v4, 0.0  ;;  %v464_v33 = vmul.f32 0.0078125, %v413_v6  ;;  %v1182_v30 = vpop.eup %1181  ;;  %v2684_v40 = vld [vmem:[#allocation44_spill] sm:$0xff]  ;;  %v864_v39 = vld [vmem:[#allocation5 + $0x150] sm:$0xff]  ;;  %v2688_v62 = vld [vmem:[#allocation99_spill] sm:$0xff] }
 0x183   :  { %1062 = vst [vmem:[#allocation8 + $0x120] sm:$0xff] %v1011_v61  ;;  %v910_v59 = vmul.f32 %v859_v21, %v808_v25  ;;  %v664_v35 = vadd.f32 1e-05, %v613_v14  ;;  %v615_v57 = vmax.f32 %v564_v53, 0.0  ;;  %v565_v47 = vsub.f32 %v463_v50, %v2157_v23  ;;  %v2685_v21 = vld [vmem:[#allocation53_spill] sm:$0xff]  ;;  %v2687_v63 = vld [vmem:[#allocation96_spill] sm:$0xff] }
 0x184   :  { %v911_v24 = vmul.f32 %v860_v48, %v809_v18  ;;  %v2679_v11 = vsub.f32 %v2677_v41, %v2678_v12  ;;  %v665_v19 = vadd.f32 1e-05, %v614_v17  ;;  %v566_v34 = vsub.f32 %v464_v33, %v2264_v16  ;;  %v1204_v48 = vld [vmem:[#allocation2 + $0x158] sm:$0xff]  ;;  %v865_v53 = vld [vmem:[#allocation5 + $0x158] sm:$0xff]  ;;  %v967_v33 = vld [vmem:[#allocation7 + $0x158] sm:$0xff] }
 0x185   :  { %v1012_v42 = vadd.f32 %v961_v5, %v910_v59  ;;  %v2682_v8 = vsub.f32 %v2680_v20, %v2681_v22  ;;  %1193 = vrsqrt.f32 %v664_v35  ;;  %v666_v36 = vadd.f32 1e-05, %v615_v57  ;;  %v1184_v2 = vpop.eup %1183  ;;  %v966_v5 = vld [vmem:[#allocation7 + $0x150] sm:$0xff]  ;;  %v1208_v20 = vld [vmem:[#allocation2 + $0x178] sm:$0xff] }
 0x186   :  { %v810_v43 = vmul.f32 %v1180_v58, %v2679_v11  ;;  %v1013_v32 = vadd.f32 %v962_v28, %v911_v24  ;;  %1195 = vrsqrt.f32 %v665_v19  ;;  %v616_v38 = vmax.f32 %v565_v47, 0.0  ;;  %v866_v28 = vld [vmem:[#allocation5 + $0x160] sm:$0xff]  ;;  %v1206_v24 = vld [vmem:[#allocation2 + $0x168] sm:$0xff]  ;;  %v968_v47 = vld [vmem:[#allocation7 + $0x160] sm:$0xff] }
 0x187   :  { %v811_v1 = vmul.f32 %v1182_v30, %v2682_v8  ;;  %1063 = vst [vmem:[#allocation8 + $0x128] sm:$0xff] %v1012_v42  ;;  %v617_v3 = vmax.f32 %v566_v34, 0.0  ;;  %v762_v29 = vsub.f32 %v1203_v37, %v2683_v7  ;;  %1197 = vrsqrt.f32 %v666_v36  ;;  %v1186_v31 = vpop.eup %1185  ;;  %v867_v41 = vld [vmem:[#allocation5 + $0x168] sm:$0xff]  ;;  %v868_v36 = vld [vmem:[#allocation5 + $0x170] sm:$0xff] }
 0x188   :  { %v912_v23 = vmul.f32 %v861_v56, %v810_v43  ;;  %1064 = vst [vmem:[#allocation8 + $0x130] sm:$0xff] %v1013_v32  ;;  %v2686_v46 = vsub.f32 %v2684_v40, %v2685_v21  ;;  %v667_v61 = vadd.f32 1e-05, %v616_v38  ;;  %v763_v4 = vsub.f32 %v1204_v48, %v2687_v63  ;;  %v2689_v56 = vld [vmem:[#allocation98_spill] sm:$0xff]  ;;  %v969_v32 = vld [vmem:[#allocation7 + $0x168] sm:$0xff]  ;;  %v2691_v22 = vld [vmem:[#allocation100_spill] sm:$0xff] }
 0x189   :  { %v913_v16 = vmul.f32 %v862_v49, %v811_v1  ;;  %v668_v55 = vadd.f32 1e-05, %v617_v3  ;;  %v813_v25 = vmul.f32 %v1186_v31, %v762_v29  ;;  %v764_v18 = vsub.f32 %v1205_v0, %v2688_v62  ;;  %v1207_v43 = vld [vmem:[#allocation2 + $0x170] sm:$0xff]  ;;  %v2690_v49 = vld [vmem:[#allocation101_spill] sm:$0xff]  ;;  %v970_v29 = vld [vmem:[#allocation7 + $0x170] sm:$0xff] }
 0x18a   :  { %v1014_v51 = vadd.f32 %v963_v9, %v912_v23  ;;  %v812_v54 = vmul.f32 %v1184_v2, %v2686_v46  ;;  %1199 = vrsqrt.f32 %v667_v61  ;;  %v1188_v52 = vpop.eup %1187  ;;  %v765_v35 = vsub.f32 %v1206_v24, %v2689_v56  ;;  %v869_v2 = vld [vmem:[#allocation5 + $0x178] sm:$0xff]  ;;  %v1210_v21 = vld [vmem:[#allocation2 + $0x188] sm:$0xff]  ;;  %v974_v62 = vld [vmem:[#allocation7 + $0x190] sm:$0xff] }
 0x18b   :  { %v1015_v45 = vadd.f32 %v964_v26, %v913_v16  ;;  %v915_v14 = vmul.f32 %v864_v39, %v813_v25  ;;  %1201 = vrsqrt.f32 %v668_v55  ;;  %v1190_v50 = vpop.eup %1189  ;;  %v814_v59 = vmul.f32 %v1188_v52, %v763_v4  ;;  %v1209_v26 = vld [vmem:[#allocation2 + $0x180] sm:$0xff]  ;;  %v972_v39 = vld [vmem:[#allocation7 + $0x180] sm:$0xff]  ;;  %v973_v52 = vld [vmem:[#allocation7 + $0x188] sm:$0xff] }
 0x18c   :  { %1065 = vst [vmem:[#allocation8 + $0x138] sm:$0xff] %v1014_v51  ;;  %v914_v10 = vmul.f32 %v863_v27, %v812_v54  ;;  %v815_v58 = vmul.f32 %v1190_v50, %v764_v18  ;;  %v766_v19 = vsub.f32 %v1207_v43, %v2690_v49  ;;  %v767_v8 = vsub.f32 %v1208_v20, %v2691_v22  ;;  %v870_v27 = vld [vmem:[#allocation5 + $0x180] sm:$0xff]  ;;  %v971_v51 = vld [vmem:[#allocation7 + $0x178] sm:$0xff]  ;;  %v1211_v55 = vld [vmem:[#allocation2 + $0x190] sm:$0xff] }
 0x18d   :  { %1066 = vst [vmem:[#allocation8 + $0x140] sm:$0xff] %v1015_v45  ;;  %v1017_v17 = vadd.f32 %v966_v5, %v915_v14  ;;  %v916_v57 = vmul.f32 %v865_v53, %v814_v59  ;;  %v768_v38 = vsub.f32 %v1209_v26, %v2140_v44  ;;  %v769_v46 = vsub.f32 %v1210_v21, %v2134_v60  ;;  %v871_v25 = vld [vmem:[#allocation5 + $0x188] sm:$0xff] }
 0x18e   :  { %v1016_v6 = vadd.f32 %v965_v13, %v914_v10  ;;  %v917_v42 = vmul.f32 %v866_v28, %v815_v58  ;;  %v770_v44 = vsub.f32 %v1211_v55, %v2204_v15  ;;  %v872_v10 = vld [vmem:[#allocation5 + $0x190] sm:$0xff] }
 0x18f   :  { %v1192_v30 = vpop.eup %1191  ;;  %1068 = vst [vmem:[#allocation8 + $0x150] sm:$0xff] %v1017_v17  ;;  %v1018_v12 = vadd.f32 %v967_v33, %v916_v57 }
 0x190   :  { %1067 = vst [vmem:[#allocation8 + $0x148] sm:$0xff] %v1016_v6  ;;  %v816_v11 = vmul.f32 %v1192_v30, %v765_v35  ;;  %v1019_v34 = vadd.f32 %v968_v47, %v917_v42 }
 0x191   :  { %1069 = vst [vmem:[#allocation8 + $0x158] sm:$0xff] %v1018_v12 }
 0x192   :  { %v1194_v9 = vpop.eup %1193  ;;  %v918_v1 = vmul.f32 %v867_v41, %v816_v11  ;;  %1070 = vst [vmem:[#allocation8 + $0x160] sm:$0xff] %v1019_v34 }
 0x193   :  { %v1196_v23 = vpop.eup %1195  ;;  %v817_v3 = vmul.f32 %v1194_v9, %v766_v19 }
 0x194   :  { %v1198_v37 = vpop.eup %1197  ;;  %v1020_v7 = vadd.f32 %v969_v32, %v918_v1  ;;  %v818_v16 = vmul.f32 %v1196_v23, %v767_v8 }
 0x195   :  { %v919_v31 = vmul.f32 %v868_v36, %v817_v3  ;;  %v819_v40 = vmul.f32 %v1198_v37, %v768_v38 }
 0x196   :  { %1071 = vst [vmem:[#allocation8 + $0x168] sm:$0xff] %v1020_v7  ;;  %v920_v54 = vmul.f32 %v869_v2, %v818_v16 }
 0x197   :  { %v1200_v61 = vpop.eup %1199  ;;  %v1021_v45 = vadd.f32 %v970_v29, %v919_v31  ;;  %v921_v13 = vmul.f32 %v870_v27, %v819_v40 }
 0x198   :  { %v1202_v48 = vpop.eup %1201  ;;  %v1022_v63 = vadd.f32 %v971_v51, %v920_v54  ;;  %v820_v4 = vmul.f32 %v1200_v61, %v769_v46 }
 0x199   :  { %1072 = vst [vmem:[#allocation8 + $0x170] sm:$0xff] %v1021_v45  ;;  %v1023_v5 = vadd.f32 %v972_v39, %v921_v13  ;;  %v821_v0 = vmul.f32 %v1202_v48, %v770_v44 }
 0x19a   :  { %1073 = vst [vmem:[#allocation8 + $0x178] sm:$0xff] %v1022_v63  ;;  %v922_v60 = vmul.f32 %v871_v25, %v820_v4 }
 0x19b   :  { %1074 = vst [vmem:[#allocation8 + $0x180] sm:$0xff] %v1023_v5  ;;  %v923_v18 = vmul.f32 %v872_v10, %v821_v0 }
 0x19c   :  { %v1024_v14 = vadd.f32 %v973_v52, %v922_v60 }
 0x19d   :  { %v1025_v15 = vadd.f32 %v974_v62, %v923_v18 }
 0x19e   :  { %1075 = vst [vmem:[#allocation8 + $0x188] sm:$0xff] %v1024_v14 }
 0x19f   :  { %1076 = vst [vmem:[#allocation8 + $0x190] sm:$0xff] %v1025_v15 }
 0x1a0   :  { %1283 = shalt.err (!%p1280_p5)
}
 0x1a1   :  { %1088 = dma.vmem_to_hbm [thread:$0]  %s1083_s2, 6528, %s2335_s3, [#allocation4], %s1300_s17, %s1300_s17, %s1301_s18  }
 0x1a2   :  { %1296 = dma.done.wait [#allocation4], 6528  }
 0x1a3   :  { %1297 = vsyncadd [#allocation4], 4294960768 }
 0x1a4   :  { %1092 = vsyncpa [#allocation3], 1 }
 0x1a5   :  { %1093 = vsyncpa [#allocation6], 1 }
 0x1a6   :  { %1094 = vsyncpa [#allocation4], 1 }

</bundles_post_ra>
